<compile_context>
chip_gen: v5e
topology: v5e:2x2
jax: 0.10.0
libtpu: 0.0.40
codegen_flags: <defaults>
</compile_context>

<pallas_src>
import jax
import jax.numpy as jnp
from jax.experimental import pallas as pl
from jax.experimental.pallas import tpu as pltpu


_ACTS = ("relu", "relu", "tanh", "relu", "relu", "tanh")  # fixed by the module


def _round_up(x, m):
    return ((x + m - 1) // m) * m


def _mlp_kernel(x_ref, w_ref, b_ref, o_ref):
    # x_ref : (TB, P)  f32   (batch tile, lane-dense padded features)
    # w_ref : (L, P, P) bf16 (packed, zero-padded weights, [in, out] layout)
    # b_ref : (Lp, P)  f32   (packed, zero-padded biases)
    # o_ref : (TB, P)  f32
    h = x_ref[...]                       # f32 activations
    b_all = b_ref[...]                   # tiny, load once

    for i, act in enumerate(_ACTS):
        w = w_ref[i]                     # (P, P) bf16, static index -> view load
        h = jnp.dot(h.astype(jnp.bfloat16), w,
                    preferred_element_type=jnp.float32)   # f32 accumulate on MXU
        h = h + b_all[i:i + 1, :]        # f32 bias add (VPU)
        if act == "relu":
            h = jnp.maximum(h, 0.0)
        else:
            h = jnp.tanh(h)              # f32 tanh (EUP)

    o_ref[...] = h                       # lane-dense f32 store


def mlp2layers_tanh(x, params, *, block_batch=512):
    """x: [B, in_feature1] f32; params: list of 6 (W [in, out] f32, b [out] f32)."""
    B, in_feat = x.shape
    L = len(params)
    dims = [in_feat] + [w.shape[1] for (w, _) in params]
    out_dim = dims[-1]

    # Common lane-dense width for every layer (zero padding is exact here).
    P = _round_up(max(dims), 128)

    # Pack weights into one bf16 slab and biases into one f32 slab (2 DMAs).
    w_packed = jnp.zeros((L, P, P), jnp.bfloat16)
    b_packed = jnp.zeros((_round_up(L, 8), P), jnp.float32)
    for i, (w, b) in enumerate(params):
        w_packed = w_packed.at[i, :w.shape[0], :w.shape[1]].set(w.astype(jnp.bfloat16))
        b_packed = b_packed.at[i, :b.reshape(-1).shape[0]].set(b.reshape(-1))
    Lp = b_packed.shape[0]

    # Batch tiling: TB multiple of 8, as large as the batch allows (<= block_batch).
    TB = min(block_batch, _round_up(B, 8))
    B_pad = _round_up(B, TB)
    x_pad = jnp.zeros((B_pad, P), jnp.float32).at[:B, :in_feat].set(x)

    grid = (B_pad // TB,)

    n_tanh = _ACTS.count("tanh")
    cost = pl.CostEstimate(
        flops=2 * B_pad * L * P * P,
        transcendentals=n_tanh * B_pad * P,
        bytes_accessed=(x_pad.size * 4 + w_packed.size * 2
                        + b_packed.size * 4 + B_pad * P * 4),
    )

    out_pad = pl.pallas_call(
        _mlp_kernel,
        out_shape=jax.ShapeDtypeStruct((B_pad, P), jnp.float32),
        grid=grid,
        in_specs=[
            pl.BlockSpec((TB, P), lambda i: (i, 0)),        # streamed x tile
            pl.BlockSpec((L, P, P), lambda i: (0, 0, 0)),   # resident weights
            pl.BlockSpec((Lp, P), lambda i: (0, 0)),        # resident biases
        ],
        out_specs=pl.BlockSpec((TB, P), lambda i: (i, 0)),
        compiler_params=pltpu.CompilerParams(
            dimension_semantics=("parallel",)),             # 2x on v7x megacore
        cost_estimate=cost,
    )(x_pad, w_packed, b_packed)

    return out_pad[:B, :out_dim]


# ----------------------------- init / reference -----------------------------

def _xavier_uniform(key, fan_in, fan_out):
    # nn.init.xavier_uniform_ (gain=1): U(-a, a), a = sqrt(6/(fan_in+fan_out))
    a = jnp.sqrt(6.0 / (fan_in + fan_out))
    return jax.random.uniform(key, (fan_in, fan_out), jnp.float32, -a, a)


def _bias_init(key, fan_in, fan_out):
    # PyTorch nn.Linear default bias init: U(-1/sqrt(fan_in), 1/sqrt(fan_in))
    bound = 1.0 / jnp.sqrt(jnp.float32(fan_in))
    return jax.random.uniform(key, (fan_out,), jnp.float32, -bound, bound)


def make_params(key, dims):
    """dims = [in_feature1, out1, out2, out3, out4, out5, out6]."""
    params = []
    for i in range(len(dims) - 1):
        key, kw, kb = jax.random.split(key, 3)
        params.append((_xavier_uniform(kw, dims[i], dims[i + 1]),
                       _bias_init(kb, dims[i], dims[i + 1])))
    return params


def reference_mlp(x, params):
    acts = [jax.nn.relu, jax.nn.relu, jnp.tanh, jax.nn.relu, jax.nn.relu, jnp.tanh]
    h = x
    for (w, b), act in zip(params, acts):
        h = act(h @ w + b)
    return h


if __name__ == "__main__":
    key = jax.random.PRNGKey(0)

    # in_feature1, out1..out6  (small, consistent with the module)
    dims = [32, 64, 64, 32, 32, 64, 16]
    batch = 512          # small but enough to exercise a 2-step batch grid

    kx, kp = jax.random.split(key)
    x = jax.random.normal(kx, (batch, dims[0]), jnp.float32)
    params = make_params(kp, dims)

    out = mlp2layers_tanh(x, params, block_batch=256)
    out = jax.block_until_ready(out)

    ref = reference_mlp(x, params)
    assert out.shape == (batch, dims[-1])
    assert bool(jnp.all(jnp.isfinite(out)))
    # bf16 MXU inputs (f32 accumulate) -> loose tolerance vs the pure-f32 reference.
    max_err = float(jnp.max(jnp.abs(out - ref)))
    assert jnp.allclose(out, ref, atol=2e-2, rtol=2e-2), f"mismatch vs reference (max abs err {max_err})"

    print("KERNEL_OK")
</pallas_src>

<mosaic_0001>
module attributes {stable_mosaic.version = 11 : i64} {
  func.func @_mlp_kernel(%arg0: i32, %arg1: memref<256x128xf32, #tpu.memory_space<vmem>>, %arg2: memref<6x128x128xbf16, #tpu.memory_space<vmem>>, %arg3: memref<8x128xf32, #tpu.memory_space<vmem>>, %arg4: memref<256x128xf32, #tpu.memory_space<vmem>>) attributes {dimension_semantics = [#tpu.dimension_semantics<parallel>], iteration_bounds = array<i64: 2>, scalar_prefetch = 0 : i64, scratch_operands = 0 : i64, tpu.core_type = #tpu.core_type<tc>, window_params = [{transform_indices = @transform_0, window_bounds = array<i64: 256, 128>}, {pipeline_mode = #tpu.pipeline_mode<synchronous>, transform_indices = @transform_1, window_bounds = array<i64: 6, 128, 128>}, {pipeline_mode = #tpu.pipeline_mode<synchronous>, transform_indices = @transform_2, window_bounds = array<i64: 8, 128>}, {transform_indices = @transform_3, window_bounds = array<i64: 256, 128>}]} {
    %c0 = arith.constant 0 : index
    %c0_0 = arith.constant 0 : index
    %0 = vector.load %arg1[%c0, %c0_0] : memref<256x128xf32, #tpu.memory_space<vmem>>, vector<256x128xf32>
    %c0_1 = arith.constant 0 : index
    %c0_2 = arith.constant 0 : index
    %1 = vector.load %arg3[%c0_1, %c0_2] : memref<8x128xf32, #tpu.memory_space<vmem>>, vector<8x128xf32>
    %c0_3 = arith.constant 0 : index
    %c0_4 = arith.constant 0 : index
    %c0_5 = arith.constant 0 : index
    %2 = vector.load %arg2[%c0_3, %c0_4, %c0_5] : memref<6x128x128xbf16, #tpu.memory_space<vmem>>, vector<1x128x128xbf16>
    %3 = vector.shape_cast %2 : vector<1x128x128xbf16> to vector<128x128xbf16>
    %4 = arith.truncf %0 : vector<256x128xf32> to vector<256x128xbf16>
    %cst = arith.constant dense<0.000000e+00> : vector<256x128xf32>
    %5 = tpu.matmul %4, %3, %cst {dimension_numbers = #tpu.dot_dimension_numbers<[1], [0], [0], [1], [0, 0, 1, 1], [], []>} : vector<256x128xbf16>, vector<128x128xbf16>, vector<256x128xf32> -> vector<256x128xf32>
    %6 = vector.extract_strided_slice %1 {offsets = [0, 0], sizes = [1, 128], strides = [1, 1]} : vector<8x128xf32> to vector<1x128xf32>
    %7 = vector.broadcast %6 : vector<1x128xf32> to vector<256x128xf32>
    %8 = arith.addf %5, %7 : vector<256x128xf32>
    %cst_6 = arith.constant 0.000000e+00 : f32
    %9 = vector.broadcast %cst_6 : f32 to vector<256x128xf32>
    %10 = arith.maximumf %8, %9 : vector<256x128xf32>
    %c1 = arith.constant 1 : index
    %c0_7 = arith.constant 0 : index
    %c0_8 = arith.constant 0 : index
    %11 = vector.load %arg2[%c1, %c0_7, %c0_8] : memref<6x128x128xbf16, #tpu.memory_space<vmem>>, vector<1x128x128xbf16>
    %12 = vector.shape_cast %11 : vector<1x128x128xbf16> to vector<128x128xbf16>
    %13 = arith.truncf %10 : vector<256x128xf32> to vector<256x128xbf16>
    %cst_9 = arith.constant dense<0.000000e+00> : vector<256x128xf32>
    %14 = tpu.matmul %13, %12, %cst_9 {dimension_numbers = #tpu.dot_dimension_numbers<[1], [0], [0], [1], [0, 0, 1, 1], [], []>} : vector<256x128xbf16>, vector<128x128xbf16>, vector<256x128xf32> -> vector<256x128xf32>
    %15 = vector.extract_strided_slice %1 {offsets = [1, 0], sizes = [1, 128], strides = [1, 1]} : vector<8x128xf32> to vector<1x128xf32>
    %16 = vector.broadcast %15 : vector<1x128xf32> to vector<256x128xf32>
    %17 = arith.addf %14, %16 : vector<256x128xf32>
    %cst_10 = arith.constant 0.000000e+00 : f32
    %18 = vector.broadcast %cst_10 : f32 to vector<256x128xf32>
    %19 = arith.maximumf %17, %18 : vector<256x128xf32>
    %c2 = arith.constant 2 : index
    %c0_11 = arith.constant 0 : index
    %c0_12 = arith.constant 0 : index
    %20 = vector.load %arg2[%c2, %c0_11, %c0_12] : memref<6x128x128xbf16, #tpu.memory_space<vmem>>, vector<1x128x128xbf16>
    %21 = vector.shape_cast %20 : vector<1x128x128xbf16> to vector<128x128xbf16>
    %22 = arith.truncf %19 : vector<256x128xf32> to vector<256x128xbf16>
    %cst_13 = arith.constant dense<0.000000e+00> : vector<256x128xf32>
    %23 = tpu.matmul %22, %21, %cst_13 {dimension_numbers = #tpu.dot_dimension_numbers<[1], [0], [0], [1], [0, 0, 1, 1], [], []>} : vector<256x128xbf16>, vector<128x128xbf16>, vector<256x128xf32> -> vector<256x128xf32>
    %24 = vector.extract_strided_slice %1 {offsets = [2, 0], sizes = [1, 128], strides = [1, 1]} : vector<8x128xf32> to vector<1x128xf32>
    %25 = vector.broadcast %24 : vector<1x128xf32> to vector<256x128xf32>
    %26 = arith.addf %23, %25 : vector<256x128xf32>
    %27 = math.tanh %26 : vector<256x128xf32>
    %c3 = arith.constant 3 : index
    %c0_14 = arith.constant 0 : index
    %c0_15 = arith.constant 0 : index
    %28 = vector.load %arg2[%c3, %c0_14, %c0_15] : memref<6x128x128xbf16, #tpu.memory_space<vmem>>, vector<1x128x128xbf16>
    %29 = vector.shape_cast %28 : vector<1x128x128xbf16> to vector<128x128xbf16>
    %30 = arith.truncf %27 : vector<256x128xf32> to vector<256x128xbf16>
    %cst_16 = arith.constant dense<0.000000e+00> : vector<256x128xf32>
    %31 = tpu.matmul %30, %29, %cst_16 {dimension_numbers = #tpu.dot_dimension_numbers<[1], [0], [0], [1], [0, 0, 1, 1], [], []>} : vector<256x128xbf16>, vector<128x128xbf16>, vector<256x128xf32> -> vector<256x128xf32>
    %32 = vector.extract_strided_slice %1 {offsets = [3, 0], sizes = [1, 128], strides = [1, 1]} : vector<8x128xf32> to vector<1x128xf32>
    %33 = vector.broadcast %32 : vector<1x128xf32> to vector<256x128xf32>
    %34 = arith.addf %31, %33 : vector<256x128xf32>
    %cst_17 = arith.constant 0.000000e+00 : f32
    %35 = vector.broadcast %cst_17 : f32 to vector<256x128xf32>
    %36 = arith.maximumf %34, %35 : vector<256x128xf32>
    %c4 = arith.constant 4 : index
    %c0_18 = arith.constant 0 : index
    %c0_19 = arith.constant 0 : index
    %37 = vector.load %arg2[%c4, %c0_18, %c0_19] : memref<6x128x128xbf16, #tpu.memory_space<vmem>>, vector<1x128x128xbf16>
    %38 = vector.shape_cast %37 : vector<1x128x128xbf16> to vector<128x128xbf16>
    %39 = arith.truncf %36 : vector<256x128xf32> to vector<256x128xbf16>
    %cst_20 = arith.constant dense<0.000000e+00> : vector<256x128xf32>
    %40 = tpu.matmul %39, %38, %cst_20 {dimension_numbers = #tpu.dot_dimension_numbers<[1], [0], [0], [1], [0, 0, 1, 1], [], []>} : vector<256x128xbf16>, vector<128x128xbf16>, vector<256x128xf32> -> vector<256x128xf32>
    %41 = vector.extract_strided_slice %1 {offsets = [4, 0], sizes = [1, 128], strides = [1, 1]} : vector<8x128xf32> to vector<1x128xf32>
    %42 = vector.broadcast %41 : vector<1x128xf32> to vector<256x128xf32>
    %43 = arith.addf %40, %42 : vector<256x128xf32>
    %cst_21 = arith.constant 0.000000e+00 : f32
    %44 = vector.broadcast %cst_21 : f32 to vector<256x128xf32>
    %45 = arith.maximumf %43, %44 : vector<256x128xf32>
    %c5 = arith.constant 5 : index
    %c0_22 = arith.constant 0 : index
    %c0_23 = arith.constant 0 : index
    %46 = vector.load %arg2[%c5, %c0_22, %c0_23] : memref<6x128x128xbf16, #tpu.memory_space<vmem>>, vector<1x128x128xbf16>
    %47 = vector.shape_cast %46 : vector<1x128x128xbf16> to vector<128x128xbf16>
    %48 = arith.truncf %45 : vector<256x128xf32> to vector<256x128xbf16>
    %cst_24 = arith.constant dense<0.000000e+00> : vector<256x128xf32>
    %49 = tpu.matmul %48, %47, %cst_24 {dimension_numbers = #tpu.dot_dimension_numbers<[1], [0], [0], [1], [0, 0, 1, 1], [], []>} : vector<256x128xbf16>, vector<128x128xbf16>, vector<256x128xf32> -> vector<256x128xf32>
    %50 = vector.extract_strided_slice %1 {offsets = [5, 0], sizes = [1, 128], strides = [1, 1]} : vector<8x128xf32> to vector<1x128xf32>
    %51 = vector.broadcast %50 : vector<1x128xf32> to vector<256x128xf32>
    %52 = arith.addf %49, %51 : vector<256x128xf32>
    %53 = math.tanh %52 : vector<256x128xf32>
    %c0_25 = arith.constant 0 : index
    %c0_26 = arith.constant 0 : index
    %54 = vector.load %arg4[%c0_25, %c0_26] : memref<256x128xf32, #tpu.memory_space<vmem>>, vector<256x128xf32>
    tpu.vector_store %arg4[%c0_25, %c0_26], %53 {strides = array<i32>} : memref<256x128xf32, #tpu.memory_space<vmem>>, vector<256x128xf32>,
    return
  }
  func.func @transform_0(%arg0: i32) -> (i32, i32) {
    %c0_i32 = arith.constant 0 : i32
    %c0_i32_0 = arith.constant 0 : i32
    return %arg0, %c0_i32 : i32, i32
  }
  func.func @transform_1(%arg0: i32) -> (i32, i32, i32) {
    %c0_i32 = arith.constant 0 : i32
    %c0_i32_0 = arith.constant 0 : i32
    %c0_i32_1 = arith.constant 0 : i32
    %c0_i32_2 = arith.constant 0 : i32
    return %c0_i32, %c0_i32_0, %c0_i32_1 : i32, i32, i32
  }
  func.func @transform_2(%arg0: i32) -> (i32, i32) {
    %c0_i32 = arith.constant 0 : i32
    %c0_i32_0 = arith.constant 0 : i32
    %c0_i32_1 = arith.constant 0 : i32
    return %c0_i32, %c0_i32_0 : i32, i32
  }
  func.func @transform_3(%arg0: i32) -> (i32, i32) {
    %c0_i32 = arith.constant 0 : i32
    %c0_i32_0 = arith.constant 0 : i32
    return %arg0, %c0_i32 : i32, i32
  }
}

</mosaic_0001>

<bundles_post_ra>
// kernel: tpu_custom_call.1
= control target key start
LH: loop header
LB: loop body
LE: loop exit
PB: predicated region body
PF: predicated region fallthrough
CT: control target
= control target key end

     0   :  { %8 = vsyncpa [#allocation3], 0  ;;  %s2710_s0 = inlined_call_operand.hbm [shape: f32[512,128], index: 0, kind: input, shape index: {}]   ;;  %s2711_s1 = inlined_call_operand.hbm [shape: bf16[6,128,128], index: 1, kind: input, shape index: {}]   ;;  %s2712_s2 = inlined_call_operand.hbm [shape: f32[8,128], index: 2, kind: input, shape index: {}]   ;;  %s2713_s3 = inlined_call_operand.hbm [shape: f32[512,128], index: 3, kind: output, shape index: {}]  }
   0x1   :  { %10 = vsyncpa [#allocation3 + $0x1], 0 }
   0x2   :  { %11 = vsyncpa [#allocation6], 0 }
   0x3   :  { %12 = vsyncpa [#allocation4], 0 }
   0x4   :  { %14 = vsyncpa [#allocation4 + $0x1], 0  ;;  %s2282_s12 = smov 0   ;;  %s2284_s13 = smov 0  }
   0x5   :  { %s2286_s14 = smov 0   ;;  %s2288_s15 = smov 0  }
   0x6 LB: > { %s2303_s16 = sadd.s32 4294967295, %s2252_s15   ;;  %s1614_s17 = sadd.s32 4294967294, %s2252_s15   ;;  %s2252_s15 = sphi %s2288_s15, %s2723_s15   ;;  %s2248_s14 = sphi %s2286_s14, %s2722_s14   ;;  %s2244_s13 = sphi %s2284_s13, %s2721_s13   ;;  %s2240_s12 = sphi %s2282_s12, %s2720_s12  }
   0x7   : > { %p40_p0 = scmp.ne.s32.totalorder %s2244_s13, %s2240_s12  ;;  %p41_p1 = scmp.eq.s32.totalorder %s2303_s16, 0 }
   0x8   : > { %p106_p2 = scmp.eq.s32.totalorder %s2303_s16, 1  ;;  %p112_p3 = scmp.eq.s32.totalorder %s1614_s17, 1 }
   0x9   : > { %p2312_p4 = por %p41_p1, %p40_p0  ;;  %p1615_p5 = scmp.ge.s32.totalorder %s2252_s15, 1 }
   0xa   : > { %p2317_p6 = por %p112_p3, %p40_p0  ;;  %p119_p7 = scmp.lt.s32.totalorder %s2252_s15, 3 }
   0xb   : > { %s130_s22 = sshll.u32 %s2711_s1, 4  ;;  %s2254_s24 = smov [#allocation5]   ;;  %s131_s22 = int_to_ptr.hbm [resolvable:$true] %s130_s22 }
   0xc   : > { %p2325_p8 = pnand %p1615_p5, %p119_p7  ;;  %s132_s25 = sshll.u32 %s2254_s24, 4  ;;  %s133_s25 = int_to_ptr.vmem [resolvable:$true] %s132_s25 }
   0xd   : > { %s145_s28 = sshll.u32 %s2712_s2, 4  ;;  %s2255_s29 = smov 64   ;;  %s146_s28 = int_to_ptr.hbm [resolvable:$true] %s145_s28 }
   0xe   : > { %p1902_p9 = pneg %p2325_p8  ;;  %s2256_s30 = smov 4  }
   0xf   : > { %s2257_s4 = smov [#allocation7]   ;;  %s2338_s6 = sadd.s32 1, %s2252_s15  }
  0x10   : > { %p1903_p10 = pnand %p1902_p9, %p41_p1  ;;  %s147_s5 = sshll.u32 %s2257_s4, 4  ;;  %s148_s5 = int_to_ptr.vmem [resolvable:$true] %s147_s5 }
  0x11   : > { %s27_s7 = sadd.s32 1, %s2248_s14  ;;  %s24_s8 = ssub.s32 %s2252_s15, %s2338_s6 }
  0x12   : > { %1905 = dma.hbm_to_vmem [thread:$0]  (!%p1903_p10), %s131_s22, 6144, %s133_s25, [#allocation6], %s2255_s29, %s2255_s29, %s2256_s30  }
  0x13   : > { %1908 = dma.hbm_to_vmem [thread:$0]  (!%p1903_p10), %s146_s28, 128, %s148_s5, [#allocation6]  }
  0x14   : > { %p34_p12 = scmp.ne.s32.totalorder %s2248_s14, %s2244_s13  ;;  %p25_p13 = scmp.eq.s32.totalorder %s24_s8, 0 }
  0x15   : > { %p35_p0 = scmp.eq.s32.totalorder %s2252_s15, 0  ;;  %p1919_p5 = scmp.lt.s32.totalorder %s2252_s15, 2 }
  0x16   : > { %p2348_p3 = por %p106_p2, %p34_p12  ;;  %s158_s11 = sand.u32 1, %s2248_s14  }
  0x17   : > { %s2354_s10 = scalar_select %p25_p13, %s2248_s14, %s27_s7  }
  0x18   : > { %p36_p7 = por %p35_p0, %p34_p12  ;;  %s1619_s17 = sshll.u32 %s158_s11, 8 }
  0x19   : > { %s1824_s20 = sshll.u32 %s2252_s15, 8  ;;  %s162_s25 = scalar_lea.vmem [#allocation2], %s1619_s17 }
  0x1a   : > { %s167_s24 = scalar_lea.hbm %s2710_s0, %s1824_s20  ;;  %s170_s26 = sshll.u32 %s162_s25, 4  ;;  %s171_s26 = int_to_ptr.vmem [resolvable:$true] %s170_s26 }
  0x1b   : > { %s168_s27 = sshll.u32 %s167_s24, 4  ;;  %p2361_p2 = pnand %p1919_p5, %p36_p7  ;;  %s169_s27 = int_to_ptr.hbm [resolvable:$true] %s168_s27 }
  0x1c   : > { %s159_s29 = scalar_lea.sflag [#allocation3], %s158_s11  ;;  %s2152_s30 = sshra.s32 %s169_s27, 4  ;;  %s2153_s30 = int_to_ptr.hbm [resolvable:$true] %s2152_s30 }
  0x1d   : > { %s2154_s4 = scalar_lea.hbm %s2153_s30, 256  ;;  %p2156_p10 = pneg %p2361_p2 }
  0x1e   : > { %p2155_p9 = scmp.ne.s32.totalorder %s2153_s30, %s2154_s4  ;;  %s2159_s8 = scalar_lea.hbm %s2710_s0, 512 }
  0x1f   : > { %p2160_p0 = scmp.lt.s32.totalorder %s2153_s30, %s2710_s0  ;;  %p2161_p5 = scmp.lt.s32.totalorder %s2159_s8, %s2154_s4 }
  0x20   : > { %p2157_p12 = pnand %p2156_p10, %p2155_p9 }
  0x21   : > { %p2162_p7 = por %p2161_p5, %p2160_p0 }
  0x22   : > { %p2158_p13 = pneg %p2157_p12 }
  0x24   : > { %p2163_p11 = pnand %p2162_p7, %p2158_p13 }
  0x26   : > { %2166 = shalt.err (!%p2163_p11)
}
  0x27   : > { %s2258_s11 = smov 128   ;;  %s2259_s21 = smov 8  }
  0x28   : > { %1912 = dma.hbm_to_vmem [thread:$0]  (!%p2361_p2), %s169_s27, 4096, %s171_s26, %s159_s29, %s2258_s11, %s2258_s11, %s2259_s21  }
  0x29   : > { %182 = sbr.rel (%p2325_p8) target bundleno = 1185 (0x4a1), region = 32  ;;  %s2378_s22 = sand.u32 (!%p2325_p8), 1, %s2244_s13  }
  0x2a   : > { %s1623_s24 = sshll.u32 (!%p2325_p8), %s2378_s22, 8  ;;  %s185_s25 = scalar_lea.sflag (!%p2325_p8), [#allocation3], %s2378_s22 }
  0x2b   : > { %s2384_s30 = scalar_lea.vmem (!%p2325_p8), [#allocation2], %s1623_s24 }
  0x2e   : > { %2227 = dma.done.wait (%p2312_p4), %s185_s25, 4096  }
  0x2f   : > { %2229 = vsyncadd (%p2312_p4), %s185_s25, 4294963200 }
  0x30   : > { %2231 = dma.done.wait (%p41_p1), [#allocation6], 6272  }
  0x31   : > { %2233 = vsyncadd (%p41_p1), [#allocation6], 4294961024  ;;  %v1832_v0 = vld [vmem:[#allocation5 + $0x38] sm:$0xff]  ;;  %v1831_v1 = vld [vmem:[#allocation5 + $0x30] sm:$0xff]  ;;  %s2598_s18 = scalar_lea.vmem [#allocation8], %s1623_s24  ;;  %s1873_s23 = sshll.u32 %s2303_s16, 8 }
  0x32   : > { %338 = vmatpush.bf16.msra.mxu0 %v1832_v0  ;;  %1874 = vmatpush.bf16.msra.mxu2 %v1832_v0  ;;  %v1830_v2 = vld [vmem:[#allocation5 + $0x28] sm:$0xff]  ;;  %v1829_v3 = vld [vmem:[#allocation5 + $0x20] sm:$0xff]  ;;  %v1828_v4 = vld [vmem:[#allocation5 + $0x18] sm:$0xff]  ;;  %s1518_s28 = scalar_lea.hbm %s2713_s3, %s1873_s23  ;;  %s1519_s29 = sshll.u32 %s2598_s18, 4  ;;  %s1520_s29 = int_to_ptr.vmem [resolvable:$true] %s1519_s29 }
  0x33   : > { %v1827_v5 = vld [vmem:[#allocation5 + $0x10] sm:$0xff]  ;;  %v1826_v6 = vld [vmem:[#allocation5 + $0x8] sm:$0xff]  ;;  %v1825_v7 = vld [vmem:[#allocation5] sm:$0xff]  ;;  %s1521_s4 = sshll.u32 %s1518_s28, 4  ;;  %s1507_s5 = scalar_lea.sflag [#allocation4], %s2378_s22  ;;  %s1522_s4 = int_to_ptr.hbm [resolvable:$true] %s1521_s4 }
  0x34   : > { %v224_v8 = vld [vmem:[%s2384_s30] sm:$0xff]  ;;  %v225_v9 = vld [vmem:[%s2384_s30 + $0x8] sm:$0xff]  ;;  %v226_v11 = vld [vmem:[%s2384_s30 + $0x10] sm:$0xff]  ;;  %s2196_s7 = sshra.s32 %s1522_s4, 4  ;;  %s2202_s20 = scalar_lea.hbm %s2713_s3, 512  ;;  %s2197_s7 = int_to_ptr.hbm [resolvable:$true] %s2196_s7 }
  0x35   : > { %v273_v10 = vpack.c.bf16 %v225_v9, %v224_v8  ;;  %v227_v12 = vld [vmem:[%s2384_s30 + $0x18] sm:$0xff]  ;;  %v228_v14 = vld [vmem:[%s2384_s30 + $0x20] sm:$0xff]  ;;  %v229_v15 = vld [vmem:[%s2384_s30 + $0x28] sm:$0xff]  ;;  %s2198_s16 = scalar_lea.hbm %s2197_s7, 256  ;;  %p2203_p11 = scmp.lt.s32.totalorder %s2197_s7, %s2713_s3 }
  0x36   : > { %339 = vmatpush.bf16.msra.mxu0 %v1831_v1  ;;  %1875 = vmatpush.bf16.msra.mxu2 %v1831_v1  ;;  %v274_v13 = vpack.c.bf16 %v227_v12, %v226_v11  ;;  %v275_v16 = vpack.c.bf16 %v229_v15, %v228_v14  ;;  %v230_v17 = vld [vmem:[%s2384_s30 + $0x30] sm:$0xff]  ;;  %v231_v18 = vld [vmem:[%s2384_s30 + $0x38] sm:$0xff]  ;;  %v232_v20 = vld [vmem:[%s2384_s30 + $0x40] sm:$0xff]  ;;  %p2199_p1 = scmp.ne.s32.totalorder %s2197_s7, %s2198_s16  ;;  %p2204_p2 = scmp.lt.s32.totalorder %s2202_s20, %s2198_s16 }
  0x37   : > { %v276_v19 = vpack.c.bf16 %v231_v18, %v230_v17  ;;  %v233_v21 = vld [vmem:[%s2384_s30 + $0x48] sm:$0xff]  ;;  %v240_v23 = vld [vmem:[%s2384_s30 + $0x80] sm:$0xff]  ;;  %v1840_v25 = vld [vmem:[#allocation5 + $0x78] sm:$0xff] }
  0x38   : > { %v277_v22 = vpack.c.bf16 %v233_v21, %v232_v20  ;;  %v241_v24 = vld [vmem:[%s2384_s30 + $0x88] sm:$0xff]  ;;  %541 = vmatpush.bf16.msra.mxu1 %v1840_v25  ;;  %1882 = vmatpush.bf16.msra.mxu3 %v1840_v25  ;;  %v234_v27 = vld [vmem:[%s2384_s30 + $0x50] sm:$0xff]  ;;  %v235_v28 = vld [vmem:[%s2384_s30 + $0x58] sm:$0xff]  ;;  %p2200_p4 = pnand %p2199_p1, %p2348_p3  ;;  %p2205_p9 = por %p2204_p2, %p2203_p11 }
  0x39   : > { %v281_v26 = vpack.c.bf16 %v241_v24, %v240_v23  ;;  %v278_v29 = vpack.c.bf16 %v235_v28, %v234_v27  ;;  %v1839_v30 = vld [vmem:[#allocation5 + $0x70] sm:$0xff]  ;;  %v243_v32 = vld [vmem:[%s2384_s30 + $0x98] sm:$0xff]  ;;  %v1838_v34 = vld [vmem:[#allocation5 + $0x68] sm:$0xff] }
  0x3a   : > { %340 = vmatpush.bf16.msra.mxu0 %v1830_v2  ;;  %1876 = vmatpush.bf16.msra.mxu2 %v1830_v2  ;;  %v242_v31 = vld [vmem:[%s2384_s30 + $0x90] sm:$0xff]  ;;  %v1837_v35 = vld [vmem:[#allocation5 + $0x60] sm:$0xff]  ;;  %v237_v37 = vld [vmem:[%s2384_s30 + $0x68] sm:$0xff]  ;;  %p2201_p8 = pneg %p2200_p4 }
  0x3b   : > { %v282_v33 = vpack.c.bf16 %v243_v32, %v242_v31  ;;  %v236_v36 = vld [vmem:[%s2384_s30 + $0x60] sm:$0xff]  ;;  %v1836_v38 = vld [vmem:[#allocation5 + $0x58] sm:$0xff]  ;;  %v1835_v40 = vld [vmem:[#allocation5 + $0x50] sm:$0xff] }
  0x3c   : > { %542 = vmatpush.bf16.msra.mxu1 %v1839_v30  ;;  %1883 = vmatpush.bf16.msra.mxu3 %v1839_v30  ;;  %v279_v39 = vpack.c.bf16 %v237_v37, %v236_v36  ;;  %v244_v41 = vld [vmem:[%s2384_s30 + $0xa0] sm:$0xff]  ;;  %v245_v42 = vld [vmem:[%s2384_s30 + $0xa8] sm:$0xff]  ;;  %v238_v46 = vld [vmem:[%s2384_s30 + $0x70] sm:$0xff]  ;;  %p2206_p10 = pnand %p2205_p9, %p2201_p8 }
  0x3d   : > { %v283_v43 = vpack.c.bf16 %v245_v42, %v244_v41  ;;  %v1834_v44 = vld [vmem:[#allocation5 + $0x48] sm:$0xff]  ;;  %v1833_v45 = vld [vmem:[#allocation5 + $0x40] sm:$0xff]  ;;  %v239_v47 = vld [vmem:[%s2384_s30 + $0x78] sm:$0xff] }
  0x3e   : > { %341 = vmatpush.bf16.msra.mxu0 %v1829_v3  ;;  %1877 = vmatpush.bf16.msra.mxu2 %v1829_v3  ;;  %v280_v48 = vpack.c.bf16 %v239_v47, %v238_v46  ;;  %v246_v49 = vld [vmem:[%s2384_s30 + $0xb0] sm:$0xff]  ;;  %v247_v50 = vld [vmem:[%s2384_s30 + $0xb8] sm:$0xff]  ;;  %v2418_v53 = vld [vmem:[#allocation7] sm:$0xff] }
  0x3f   : > { %v284_v51 = vpack.c.bf16 %v247_v50, %v246_v49  ;;  %v1848_v52 = vld [vmem:[#allocation5 + $0xb8] sm:$0xff]  ;;  %v2421_v55 = vperm.slane %v2418_v53, 0  ;;  %v248_v56 = vld [vmem:[%s2384_s30 + $0xc0] sm:$0xff]  ;;  %v249_v57 = vld [vmem:[%s2384_s30 + $0xc8] sm:$0xff] }
  0x40   : > { %543 = vmatpush.bf16.msra.mxu1 %v1838_v34  ;;  %1884 = vmatpush.bf16.msra.mxu3 %v1838_v34  ;;  %v285_v58 = vpack.c.bf16 %v249_v57, %v248_v56  ;;  %v1847_v0 = vld [vmem:[#allocation5 + $0xb0] sm:$0xff]  ;;  %v1846_v11 = vld [vmem:[#allocation5 + $0xa8] sm:$0xff]  ;;  %v252_v14 = vld [vmem:[%s2384_s30 + $0xe0] sm:$0xff] }
  0x41   : > { %v250_v3 = vld [vmem:[%s2384_s30 + $0xd0] sm:$0xff]  ;;  %v253_v15 = vld [vmem:[%s2384_s30 + $0xe8] sm:$0xff] }
  0x42   : > { %342 = vmatpush.bf16.msra.mxu0 %v1828_v4  ;;  %1878 = vmatpush.bf16.msra.mxu2 %v1828_v4  ;;  %v251_v4 = vld [vmem:[%s2384_s30 + $0xd8] sm:$0xff]  ;;  %v254_v25 = vld [vmem:[%s2384_s30 + $0xf0] sm:$0xff] }
  0x43   : > { %v1843_v42 = vld [vmem:[#allocation5 + $0x90] sm:$0xff] }
  0x44   : > { %544 = vmatpush.bf16.msra.mxu1 %v1837_v35  ;;  %1885 = vmatpush.bf16.msra.mxu3 %v1837_v35 }
  0x46   : > { %343 = vmatpush.bf16.msra.mxu0 %v1827_v5  ;;  %1879 = vmatpush.bf16.msra.mxu2 %v1827_v5  ;;  %v286_v5 = vpack.c.bf16 %v251_v4, %v250_v3 }
  0x48   : > { %545 = vmatpush.bf16.msra.mxu1 %v1836_v38  ;;  %1886 = vmatpush.bf16.msra.mxu3 %v1836_v38 }
  0x4a   : > { %344 = vmatpush.bf16.msra.mxu0 %v1826_v6  ;;  %1880 = vmatpush.bf16.msra.mxu2 %v1826_v6 }
  0x4c   : > { %546 = vmatpush.bf16.msra.mxu1 %v1835_v40  ;;  %1887 = vmatpush.bf16.msra.mxu3 %v1835_v40 }
  0x4e   : > { %345 = vmatpush.bf16.msra.mxu0 %v1825_v7  ;;  %1881 = vmatpush.bf16.msra.mxu2 %v1825_v7 }
  0x50   : > { %547 = vmatpush.bf16.msra.mxu1 %v1834_v44  ;;  %1888 = vmatpush.bf16.msra.mxu3 %v1834_v44 }
  0x51   : > { %346 = vmatmul.bf16.vlgmr.msra.gmra.mxu0 %v273_v10  ;;  %386 = vmatmul.bf16.vlgmr.msra.gmra.mxu2 %v281_v26  ;;  %v255_v26 = vld [vmem:[%s2384_s30 + $0xf8] sm:$0xff] }
  0x52   : > { %744 = vmatpush.bf16.msrb.mxu2 %v1848_v52  ;;  %v288_v27 = vpack.c.bf16 %v255_v26, %v254_v25 }
  0x54   : > { %548 = vmatpush.bf16.msra.mxu1 %v1833_v45  ;;  %1889 = vmatpush.bf16.msra.mxu3 %v1833_v45 }
  0x56   : > { %745 = vmatpush.bf16.msrb.mxu2 %v1847_v0 }
  0x5a   : > { %746 = vmatpush.bf16.msrb.mxu2 %v1846_v11 }
  0x61   : > { %351 = vmatmul.bf16.gmra.mxu0 %v274_v13  ;;  %391 = vmatmul.bf16.gmra.mxu2 %v282_v33  ;;  %v1844_v33 = vld [vmem:[#allocation5 + $0x98] sm:$0xff] }
  0x71   : > { %356 = vmatmul.bf16.gmra.mxu0 %v275_v16  ;;  %396 = vmatmul.bf16.gmra.mxu2 %v283_v43  ;;  %v287_v16 = vpack.c.bf16 %v253_v15, %v252_v14 }
  0x81   : > { %361 = vmatmul.bf16.gmra.mxu0 %v276_v19  ;;  %401 = vmatmul.bf16.gmra.mxu2 %v284_v51 }
  0x91   : > { %366 = vmatmul.bf16.gmra.mxu0 %v277_v22  ;;  %406 = vmatmul.bf16.gmra.mxu2 %v285_v58  ;;  %v1845_v22 = vld [vmem:[#allocation5 + $0xa0] sm:$0xff] }
  0x92   : > { %747 = vmatpush.bf16.msrb.mxu2 %v1845_v22 }
  0x96   : > { %748 = vmatpush.bf16.msrb.mxu2 %v1844_v33 }
  0x9a   : > { %749 = vmatpush.bf16.msrb.mxu2 %v1843_v42 }
  0xa1   : > { %371 = vmatmul.bf16.gmra.mxu0 %v278_v29  ;;  %411 = vmatmul.bf16.gmra.mxu2 %v286_v5 }
  0xb1   : > { %376 = vmatmul.bf16.gmra.mxu0 %v279_v39  ;;  %416 = vmatmul.bf16.gmra.mxu2 %v287_v16 }
  0xc1   : > { %381 = vmatmul.bf16.gmra.mxu0 %v280_v48  ;;  %421 = vmatmul.bf16.gmra.mxu2 %v288_v27 }
  0xce   : > { %v347_v54 = vpop.f32.mrf.mxu0 }
  0xcf   : > { %v348_v59 = vadd.f32 %v347_v54, %v2421_v55 }
  0xd1   : > { %v427_v62 = vmax.f32 %v348_v59, 0.0  ;;  %v1842_v59 = vld [vmem:[#allocation5 + $0x88] sm:$0xff] }
  0xd2   : > { %750 = vmatpush.bf16.msrb.mxu2 %v1842_v59 }
  0xd4   : > { %v387_v39 = vpop.f32.mrf.mxu2 }
  0xd5   : > { %v388_v44 = vadd.f32 %v387_v39, %v2421_v55 }
  0xd6   : > { %v349_v60 = vpop.f32.mrf.mxu0 }
  0xd7   : > { %v350_v61 = vadd.f32 %v349_v60, %v2421_v55  ;;  %v443_v47 = vmax.f32 %v388_v44, 0.0 }
  0xd9   : > { %v428_v63 = vmax.f32 %v350_v61, 0.0 }
  0xdb   : > { %v476_v1 = vpack.c.bf16 %v428_v63, %v427_v62  ;;  %v1841_v62 = vld [vmem:[#allocation5 + $0x80] sm:$0xff] }
  0xdc   : > { %v389_v46 = vpop.f32.mrf.mxu2  ;;  %751 = vmatpush.bf16.msrb.mxu2 %v1841_v62 }
  0xdd   : > { %549 = vmatmul.bf16.vlgmr.msra.gmra.mxu1 %v476_v1  ;;  %v390_v48 = vadd.f32 %v389_v46, %v2421_v55 }
  0xde   : > { %v352_v2 = vpop.f32.mrf.mxu0 }
  0xdf   : > { %v353_v6 = vadd.f32 %v352_v2, %v2421_v55  ;;  %v444_v49 = vmax.f32 %v390_v48, 0.0 }
  0xe1   : > { %v429_v9 = vmax.f32 %v353_v6, 0.0  ;;  %v484_v51 = vpack.c.bf16 %v444_v49, %v443_v47 }
  0xe3   : > { %589 = vmatmul.bf16.vlgmr.msra.gmra.mxu3 %v484_v51  ;;  %v1855_v51 = vld [vmem:[#allocation5 + $0xf0] sm:$0xff] }
  0xe4   : > { %v392_v56 = vpop.f32.mrf.mxu2 }
  0xe5   : > { %v393_v61 = vadd.f32 %v392_v56, %v2421_v55 }
  0xe6   : > { %v354_v7 = vpop.f32.mrf.mxu0 }
  0xe7   : > { %v355_v8 = vadd.f32 %v354_v7, %v2421_v55  ;;  %v445_v1 = vmax.f32 %v393_v61, 0.0 }
  0xe9   : > { %v430_v10 = vmax.f32 %v355_v8, 0.0 }
  0xeb   : > { %v477_v12 = vpack.c.bf16 %v430_v10, %v429_v9 }
  0xec   : > { %v394_v0 = vpop.f32.mrf.mxu2 }
  0xed   : > { %554 = vmatmul.bf16.gmra.mxu1 %v477_v12  ;;  %v395_v2 = vadd.f32 %v394_v0, %v2421_v55 }
  0xee   : > { %v357_v13 = vpop.f32.mrf.mxu0 }
  0xef   : > { %v358_v17 = vadd.f32 %v357_v13, %v2421_v55  ;;  %v446_v3 = vmax.f32 %v395_v2, 0.0 }
  0xf1   : > { %v431_v20 = vmax.f32 %v358_v17, 0.0  ;;  %v485_v5 = vpack.c.bf16 %v446_v3, %v445_v1 }
  0xf3   : > { %594 = vmatmul.bf16.gmra.mxu3 %v485_v5 }
  0xf4   : > { %v397_v8 = vpop.f32.mrf.mxu2 }
  0xf5   : > { %v398_v12 = vadd.f32 %v397_v8, %v2421_v55 }
  0xf6   : > { %v359_v18 = vpop.f32.mrf.mxu0 }
  0xf7   : > { %v360_v19 = vadd.f32 %v359_v18, %v2421_v55  ;;  %v447_v15 = vmax.f32 %v398_v12, 0.0 }
  0xf9   : > { %v432_v21 = vmax.f32 %v360_v19, 0.0 }
  0xfb   : > { %v478_v23 = vpack.c.bf16 %v432_v21, %v431_v20 }
  0xfc   : > { %v399_v14 = vpop.f32.mrf.mxu2 }
  0xfd   : > { %559 = vmatmul.bf16.gmra.mxu1 %v478_v23  ;;  %v400_v16 = vadd.f32 %v399_v14, %v2421_v55 }
  0xfe   : > { %v362_v24 = vpop.f32.mrf.mxu0 }
  0xff   : > { %v363_v28 = vadd.f32 %v362_v24, %v2421_v55  ;;  %v448_v17 = vmax.f32 %v400_v16, 0.0 }
 0x101   : > { %v433_v31 = vmax.f32 %v363_v28, 0.0  ;;  %v486_v19 = vpack.c.bf16 %v448_v17, %v447_v15 }
 0x103   : > { %599 = vmatmul.bf16.gmra.mxu3 %v486_v19  ;;  %v1853_v19 = vld [vmem:[#allocation5 + $0xe0] sm:$0xff] }
 0x104   : > { %v402_v22 = vpop.f32.mrf.mxu2 }
 0x105   : > { %v403_v26 = vadd.f32 %v402_v22, %v2421_v55 }
 0x106   : > { %v364_v29 = vpop.f32.mrf.mxu0 }
 0x107   : > { %v365_v30 = vadd.f32 %v364_v29, %v2421_v55  ;;  %v449_v28 = vmax.f32 %v403_v26, 0.0 }
 0x109   : > { %v434_v32 = vmax.f32 %v365_v30, 0.0 }
 0x10b   : > { %v479_v34 = vpack.c.bf16 %v434_v32, %v433_v31 }
 0x10c   : > { %v404_v27 = vpop.f32.mrf.mxu2 }
 0x10d   : > { %564 = vmatmul.bf16.gmra.mxu1 %v479_v34  ;;  %v405_v29 = vadd.f32 %v404_v27, %v2421_v55  ;;  %v2456_v34 = vperm.slane %v2418_v53, 1 }
 0x10e   : > { %v367_v35 = vpop.f32.mrf.mxu0 }
 0x10f   : > { %v368_v36 = vadd.f32 %v367_v35, %v2421_v55  ;;  %v450_v30 = vmax.f32 %v405_v29, 0.0 }
 0x111   : > { %v435_v40 = vmax.f32 %v368_v36, 0.0  ;;  %v487_v31 = vpack.c.bf16 %v450_v30, %v449_v28  ;;  %v1856_v36 = vld [vmem:[#allocation5 + $0xf8] sm:$0xff] }
 0x112   : > { %947 = vmatpush.bf16.msrb.mxu3 %v1856_v36 }
 0x113   : > { %604 = vmatmul.bf16.gmra.mxu3 %v487_v31 }
 0x114   : > { %v407_v32 = vpop.f32.mrf.mxu2 }
 0x115   : > { %v408_v35 = vadd.f32 %v407_v32, %v2421_v55  ;;  %v1852_v32 = vld [vmem:[#allocation5 + $0xd8] sm:$0xff] }
 0x116   : > { %v369_v37 = vpop.f32.mrf.mxu0  ;;  %948 = vmatpush.bf16.msrb.mxu3 %v1855_v51 }
 0x117   : > { %v370_v38 = vadd.f32 %v369_v37, %v2421_v55  ;;  %v451_v39 = vmax.f32 %v408_v35, 0.0 }
 0x119   : > { %v436_v41 = vmax.f32 %v370_v38, 0.0 }
 0x11b   : > { %v480_v43 = vpack.c.bf16 %v436_v41, %v435_v40 }
 0x11c   : > { %v409_v37 = vpop.f32.mrf.mxu2 }
 0x11d   : > { %569 = vmatmul.bf16.gmra.mxu1 %v480_v43  ;;  %v410_v40 = vadd.f32 %v409_v37, %v2421_v55 }
 0x11e   : > { %v372_v45 = vpop.f32.mrf.mxu0 }
 0x11f   : > { %v373_v50 = vadd.f32 %v372_v45, %v2421_v55  ;;  %v452_v43 = vmax.f32 %v410_v40, 0.0  ;;  %v1851_v40 = vld [vmem:[#allocation5 + $0xd0] sm:$0xff] }
 0x121   : > { %v437_v57 = vmax.f32 %v373_v50, 0.0  ;;  %v488_v46 = vpack.c.bf16 %v452_v43, %v451_v39 }
 0x123   : > { %609 = vmatmul.bf16.gmra.mxu3 %v488_v46 }
 0x124   : > { %v412_v48 = vpop.f32.mrf.mxu2 }
 0x125   : > { %v413_v50 = vadd.f32 %v412_v48, %v2421_v55  ;;  %v1850_v48 = vld [vmem:[#allocation5 + $0xc8] sm:$0xff] }
 0x126   : > { %v374_v52 = vpop.f32.mrf.mxu0 }
 0x127   : > { %v375_v54 = vadd.f32 %v374_v52, %v2421_v55  ;;  %v453_v56 = vmax.f32 %v413_v50, 0.0 }
 0x129   : > { %v438_v58 = vmax.f32 %v375_v54, 0.0 }
 0x12b   : > { %v481_v60 = vpack.c.bf16 %v438_v58, %v437_v57 }
 0x12c   : > { %v414_v52 = vpop.f32.mrf.mxu2 }
 0x12d   : > { %574 = vmatmul.bf16.gmra.mxu1 %v481_v60  ;;  %v415_v57 = vadd.f32 %v414_v52, %v2421_v55 }
 0x12e   : > { %v377_v63 = vpop.f32.mrf.mxu0 }
 0x12f   : > { %v378_v4 = vadd.f32 %v377_v63, %v2421_v55  ;;  %v454_v60 = vmax.f32 %v415_v57, 0.0 }
 0x131   : > { %v439_v9 = vmax.f32 %v378_v4, 0.0  ;;  %v489_v63 = vpack.c.bf16 %v454_v60, %v453_v56  ;;  %v1854_v4 = vld [vmem:[#allocation5 + $0xe8] sm:$0xff] }
 0x132   : > { %949 = vmatpush.bf16.msrb.mxu3 %v1854_v4 }
 0x133   : > { %614 = vmatmul.bf16.gmra.mxu3 %v489_v63 }
 0x134   : > { %v417_v1 = vpop.f32.mrf.mxu2 }
 0x135   : > { %v418_v3 = vadd.f32 %v417_v1, %v2421_v55 }
 0x136   : > { %v379_v6 = vpop.f32.mrf.mxu0  ;;  %950 = vmatpush.bf16.msrb.mxu3 %v1853_v19 }
 0x137   : > { %v380_v7 = vadd.f32 %v379_v6, %v2421_v55 }
 0x139   : > { %v440_v10 = vmax.f32 %v380_v7, 0.0  ;;  %v455_v7 = vmax.f32 %v418_v3, 0.0 }
 0x13a   : > { %951 = vmatpush.bf16.msrb.mxu3 %v1852_v32 }
 0x13b   : > { %v482_v11 = vpack.c.bf16 %v440_v10, %v439_v9 }
 0x13c   : > { %v419_v5 = vpop.f32.mrf.mxu2 }
 0x13d   : > { %579 = vmatmul.bf16.gmra.mxu1 %v482_v11  ;;  %v420_v8 = vadd.f32 %v419_v5, %v2421_v55 }
 0x13e   : > { %v382_v13 = vpop.f32.mrf.mxu0  ;;  %952 = vmatpush.bf16.msrb.mxu3 %v1851_v40 }
 0x13f   : > { %v383_v18 = vadd.f32 %v382_v13, %v2421_v55  ;;  %v456_v11 = vmax.f32 %v420_v8, 0.0 }
 0x141   : > { %v441_v23 = vmax.f32 %v383_v18, 0.0  ;;  %v490_v14 = vpack.c.bf16 %v456_v11, %v455_v7 }
 0x142   : > { %953 = vmatpush.bf16.msrb.mxu3 %v1850_v48 }
 0x143   : > { %619 = vmatmul.bf16.gmra.mxu3 %v490_v14 }
 0x144   : > { %v422_v16 = vpop.f32.mrf.mxu2 }
 0x145   : > { %v423_v18 = vadd.f32 %v422_v16, %v2421_v55  ;;  %v1864_v16 = vld [vmem:[#allocation5 + $0x138] sm:$0xff] }
 0x146   : > { %v384_v20 = vpop.f32.mrf.mxu0  ;;  %1150 = vmatpush.bf16.msrb.mxu0 %v1864_v16 }
 0x147   : > { %v385_v21 = vadd.f32 %v384_v20, %v2421_v55  ;;  %v457_v22 = vmax.f32 %v423_v18, 0.0 }
 0x149   : > { %v442_v24 = vmax.f32 %v385_v21, 0.0 }
 0x14b   : > { %v483_v25 = vpack.c.bf16 %v442_v24, %v441_v23 }
 0x14c   : > { %v424_v20 = vpop.f32.mrf.mxu2 }
 0x14d   : > { %584 = vmatmul.bf16.gmra.mxu1 %v483_v25  ;;  %v425_v23 = vadd.f32 %v424_v20, %v2421_v55 }
 0x14f   : > { %v458_v26 = vmax.f32 %v425_v23, 0.0 }
 0x151   : > { %v491_v29 = vpack.c.bf16 %v458_v26, %v457_v22 }
 0x153   : > { %624 = vmatmul.bf16.gmra.mxu3 %v491_v29 }
 0x15a   : > { %v550_v33 = vpop.f32.mrf.mxu1 }
 0x15b   : > { %v551_v38 = vadd.f32 %v550_v33, %v2456_v34 }
 0x15d   : > { %v630_v44 = vmax.f32 %v551_v38, 0.0 }
 0x162   : > { %v552_v41 = vpop.f32.mrf.mxu1 }
 0x163   : > { %v553_v42 = vadd.f32 %v552_v41, %v2456_v34 }
 0x165   : > { %v631_v45 = vmax.f32 %v553_v42, 0.0 }
 0x166   : > { %v590_v46 = vpop.f32.mrf.mxu3 }
 0x167   : > { %v679_v47 = vpack.c.bf16 %v631_v45, %v630_v44 }
 0x169   : > { %752 = vmatmul.bf16.vlgmr.msrb.gmra.mxu2 %v679_v47 }
 0x16a   : > { %v555_v49 = vpop.f32.mrf.mxu1 }
 0x16b   : > { %v556_v54 = vadd.f32 %v555_v49, %v2456_v34 }
 0x16d   : > { %v632_v61 = vmax.f32 %v556_v54, 0.0 }
 0x16e   : > { %v592_v50 = vpop.f32.mrf.mxu3 }
 0x16f   : > { %v593_v7 = vadd.f32 %v592_v50, %v2456_v34 }
 0x172   : > { %v557_v58 = vpop.f32.mrf.mxu1 }
 0x173   : > { %v558_v59 = vadd.f32 %v557_v58, %v2456_v34 }
 0x175   : > { %v633_v62 = vmax.f32 %v558_v59, 0.0 }
 0x176   : > { %v595_v60 = vpop.f32.mrf.mxu3 }
 0x177   : > { %v680_v0 = vpack.c.bf16 %v633_v62, %v632_v61  ;;  %v1849_v61 = vld [vmem:[#allocation5 + $0xc0] sm:$0xff]  ;;  %v596_v14 = vadd.f32 %v595_v60, %v2456_v34 }
 0x178   : > { %954 = vmatpush.bf16.msrb.mxu3 %v1849_v61 }
 0x179   : > { %757 = vmatmul.bf16.gmra.mxu2 %v680_v0  ;;  %v648_v19 = vmax.f32 %v596_v14, 0.0  ;;  %v1860_v14 = vld [vmem:[#allocation5 + $0x118] sm:$0xff] }
 0x17a   : > { %v560_v2 = vpop.f32.mrf.mxu1 }
 0x17b   : > { %v561_v6 = vadd.f32 %v560_v2, %v2456_v34 }
 0x17d   : > { %v634_v12 = vmax.f32 %v561_v6, 0.0  ;;  %v591_v6 = vadd.f32 %v590_v46, %v2456_v34  ;;  %v1862_v46 = vld [vmem:[#allocation5 + $0x128] sm:$0xff] }
 0x17e   : > { %v597_v1 = vpop.f32.mrf.mxu3 }
 0x17f   : > { %v646_v8 = vmax.f32 %v591_v6, 0.0 }
 0x182   : > { %v562_v9 = vpop.f32.mrf.mxu1 }
 0x183   : > { %v563_v10 = vadd.f32 %v562_v9, %v2456_v34  ;;  %v647_v9 = vmax.f32 %v593_v7, 0.0 }
 0x185   : > { %v635_v13 = vmax.f32 %v563_v10, 0.0  ;;  %v687_v10 = vpack.c.bf16 %v647_v9, %v646_v8 }
 0x186   : > { %v600_v5 = vpop.f32.mrf.mxu3 }
 0x187   : > { %v681_v15 = vpack.c.bf16 %v635_v13, %v634_v12  ;;  %v2485_v13 = vperm.slane %v2418_v53, 2  ;;  %v601_v29 = vadd.f32 %v600_v5, %v2456_v34 }
 0x189   : > { %762 = vmatmul.bf16.gmra.mxu2 %v681_v15  ;;  %v598_v15 = vadd.f32 %v597_v1, %v2456_v34 }
 0x18a   : > { %v565_v17 = vpop.f32.mrf.mxu1 }
 0x18b   : > { %v566_v21 = vadd.f32 %v565_v17, %v2456_v34  ;;  %v649_v20 = vmax.f32 %v598_v15, 0.0 }
 0x18d   : > { %v636_v27 = vmax.f32 %v566_v21, 0.0  ;;  %v688_v23 = vpack.c.bf16 %v649_v20, %v648_v19 }
 0x18e   : > { %v602_v11 = vpop.f32.mrf.mxu3 }
 0x192   : > { %v567_v24 = vpop.f32.mrf.mxu1 }
 0x193   : > { %v568_v25 = vadd.f32 %v567_v24, %v2456_v34 }
 0x195   : > { %v637_v28 = vmax.f32 %v568_v25, 0.0 }
 0x196   : > { %v605_v18 = vpop.f32.mrf.mxu3 }
 0x197   : > { %v682_v30 = vpack.c.bf16 %v637_v28, %v636_v27 }
 0x199   : > { %767 = vmatmul.bf16.gmra.mxu2 %v682_v30  ;;  %v603_v30 = vadd.f32 %v602_v11, %v2456_v34 }
 0x19a   : > { %v570_v31 = vpop.f32.mrf.mxu1 }
 0x19b   : > { %v571_v33 = vadd.f32 %v570_v31, %v2456_v34  ;;  %v1863_v31 = vld [vmem:[#allocation5 + $0x130] sm:$0xff] }
 0x19c   : > { %1151 = vmatpush.bf16.msrb.mxu0 %v1863_v31 }
 0x19d   : > { %v638_v37 = vmax.f32 %v571_v33, 0.0  ;;  %v650_v33 = vmax.f32 %v601_v29, 0.0 }
 0x19e   : > { %v607_v26 = vpop.f32.mrf.mxu3 }
 0x1a0   : > { %1152 = vmatpush.bf16.msrb.mxu0 %v1862_v46 }
 0x1a2   : > { %v572_v35 = vpop.f32.mrf.mxu1 }
 0x1a3   : > { %v573_v36 = vadd.f32 %v572_v35, %v2456_v34  ;;  %v651_v35 = vmax.f32 %v603_v30, 0.0 }
 0x1a5   : > { %v639_v55 = vmax.f32 %v573_v36, 0.0 }
 0x1a7   : > { %v683_v38 = vpack.c.bf16 %v639_v55, %v638_v37  ;;  %v610_v55 = vpop.f32.mrf.mxu3 }
 0x1a8   : > { %v611_v60 = vadd.f32 %v610_v55, %v2456_v34 }
 0x1a9   : > { %772 = vmatmul.bf16.gmra.mxu2 %v683_v38  ;;  %v689_v38 = vpack.c.bf16 %v651_v35, %v650_v33 }
 0x1aa   : > { %v575_v39 = vpop.f32.mrf.mxu1 }
 0x1ab   : > { %v576_v41 = vadd.f32 %v575_v39, %v2456_v34 }
 0x1ad   : > { %v640_v44 = vmax.f32 %v576_v41, 0.0 }
 0x1b2   : > { %v577_v42 = vpop.f32.mrf.mxu1 }
 0x1b3   : > { %v578_v43 = vadd.f32 %v577_v42, %v2456_v34 }
 0x1b5   : > { %v641_v45 = vmax.f32 %v578_v43, 0.0  ;;  %v606_v43 = vadd.f32 %v605_v18, %v2456_v34 }
 0x1b7   : > { %v684_v47 = vpack.c.bf16 %v641_v45, %v640_v44  ;;  %v608_v44 = vadd.f32 %v607_v26, %v2456_v34  ;;  %v612_v45 = vpop.f32.mrf.mxu3  ;;  %v652_v48 = vmax.f32 %v606_v43, 0.0  ;;  %v1858_v43 = vld [vmem:[#allocation5 + $0x108] sm:$0xff] }
 0x1b8   : > { %v613_v61 = vadd.f32 %v612_v45, %v2456_v34 }
 0x1b9   : > { %777 = vmatmul.bf16.gmra.mxu2 %v684_v47 }
 0x1ba   : > { %v580_v49 = vpop.f32.mrf.mxu1  ;;  %v655_v1 = vmax.f32 %v613_v61, 0.0 }
 0x1bb   : > { %v581_v51 = vadd.f32 %v580_v49, %v2456_v34  ;;  %v653_v49 = vmax.f32 %v608_v44, 0.0 }
 0x1bd   : > { %v642_v56 = vmax.f32 %v581_v51, 0.0 }
 0x1c2   : > { %v582_v52 = vpop.f32.mrf.mxu1 }
 0x1c3   : > { %v583_v54 = vadd.f32 %v582_v52, %v2456_v34  ;;  %v690_v52 = vpack.c.bf16 %v653_v49, %v652_v48 }
 0x1c5   : > { %v643_v57 = vmax.f32 %v583_v54, 0.0  ;;  %v615_v54 = vpop.f32.mrf.mxu3 }
 0x1c6   : > { %v616_v11 = vadd.f32 %v615_v54, %v2456_v34 }
 0x1c7   : > { %v685_v58 = vpack.c.bf16 %v643_v57, %v642_v56 }
 0x1c8   : > { %v656_v16 = vmax.f32 %v616_v11, 0.0  ;;  %v2522_v11 = vperm.slane %v2418_v53, 3 }
 0x1c9   : > { %782 = vmatmul.bf16.gmra.mxu2 %v685_v58 }
 0x1ca   : > { %v585_v59 = vpop.f32.mrf.mxu1 }
 0x1cb   : > { %v586_v62 = vadd.f32 %v585_v59, %v2456_v34 }
 0x1cd   : > { %v644_v2 = vmax.f32 %v586_v62, 0.0  ;;  %v1861_v62 = vld [vmem:[#allocation5 + $0x120] sm:$0xff] }
 0x1ce   : > { %1153 = vmatpush.bf16.msrb.mxu0 %v1861_v62 }
 0x1d2   : > { %v587_v63 = vpop.f32.mrf.mxu1  ;;  %1154 = vmatpush.bf16.msrb.mxu0 %v1860_v14 }
 0x1d3   : > { %v588_v0 = vadd.f32 %v587_v63, %v2456_v34 }
 0x1d5   : > { %v645_v3 = vmax.f32 %v588_v0, 0.0  ;;  %v654_v0 = vmax.f32 %v611_v60, 0.0 }
 0x1d7   : > { %v686_v4 = vpack.c.bf16 %v645_v3, %v644_v2  ;;  %v617_v2 = vpop.f32.mrf.mxu3  ;;  %v691_v5 = vpack.c.bf16 %v655_v1, %v654_v0 }
 0x1d9   : > { %787 = vmatmul.bf16.gmra.mxu2 %v686_v4 }
 0x1df   : > { %v620_v9 = vpop.f32.mrf.mxu3 }
 0x1e0   : > { %v621_v26 = vadd.f32 %v620_v9, %v2456_v34 }
 0x1e2   : > { %v658_v31 = vmax.f32 %v621_v26, 0.0 }
 0x1e9   : > { %792 = vmatmul.bf16.gmra.mxu2 %v687_v10 }
 0x1ec   : > { %v753_v12 = vpop.f32.mrf.mxu2 }
 0x1ed   : > { %v754_v17 = vadd.f32 %v753_v12, %v2485_v13  ;;  %v618_v12 = vadd.f32 %v617_v2, %v2456_v34 }
 0x1ef   : > { %1963 = vtanh.f32 %v754_v17  ;;  %v657_v17 = vmax.f32 %v618_v12, 0.0 }
 0x1f1   : > { %v692_v20 = vpack.c.bf16 %v657_v17, %v656_v16 }
 0x1f4   : > { %v755_v21 = vpop.f32.mrf.mxu2 }
 0x1f5   : > { %v756_v22 = vadd.f32 %v755_v21, %v2485_v13  ;;  %v1964_v24 = vpop.eup %1963  ;;  %v622_v21 = vpop.f32.mrf.mxu3 }
 0x1f7   : > { %1965 = vtanh.f32 %v756_v22 }
 0x1f9   : > { %797 = vmatmul.bf16.gmra.mxu2 %v688_v23 }
 0x1fc   : > { %v758_v25 = vpop.f32.mrf.mxu2 }
 0x1fd   : > { %v1966_v27 = vpop.eup %1965  ;;  %v759_v32 = vadd.f32 %v758_v25, %v2485_v13  ;;  %v625_v29 = vpop.f32.mrf.mxu3 }
 0x1fe   : > { %v882_v28 = vpack.c.bf16 %v1966_v27, %v1964_v24  ;;  %v623_v27 = vadd.f32 %v622_v21, %v2456_v34 }
 0x1ff   : > { %1967 = vtanh.f32 %v759_v32 }
 0x200   : > { %955 = vmatmul.bf16.vlgmr.msrb.gmra.mxu3 %v882_v28  ;;  %v1859_v28 = vld [vmem:[#allocation5 + $0x110] sm:$0xff]  ;;  %v659_v32 = vmax.f32 %v623_v27, 0.0 }
 0x201   : > { %1155 = vmatpush.bf16.msrb.mxu0 %v1859_v28 }
 0x204   : > { %v760_v36 = vpop.f32.mrf.mxu2 }
 0x205   : > { %v761_v37 = vadd.f32 %v760_v36, %v2485_v13  ;;  %v1968_v39 = vpop.eup %1967  ;;  %v693_v36 = vpack.c.bf16 %v659_v32, %v658_v31  ;;  %v627_v55 = vpop.f32.mrf.mxu3  ;;  %1156 = vmatpush.bf16.msrb.mxu0 %v1858_v43 }
 0x207   : > { %1969 = vtanh.f32 %v761_v37 }
 0x209   : > { %802 = vmatmul.bf16.gmra.mxu2 %v689_v38 }
 0x20c   : > { %v763_v40 = vpop.f32.mrf.mxu2 }
 0x20d   : > { %v1970_v41 = vpop.eup %1969  ;;  %v764_v47 = vadd.f32 %v763_v40, %v2485_v13 }
 0x20e   : > { %v883_v42 = vpack.c.bf16 %v1970_v41, %v1968_v39  ;;  %v626_v41 = vadd.f32 %v625_v29, %v2456_v34 }
 0x20f   : > { %1971 = vtanh.f32 %v764_v47 }
 0x210   : > { %960 = vmatmul.bf16.gmra.mxu3 %v883_v42  ;;  %v628_v42 = vadd.f32 %v627_v55, %v2456_v34  ;;  %v660_v45 = vmax.f32 %v626_v41, 0.0  ;;  %v1857_v34 = vld [vmem:[#allocation5 + $0x100] sm:$0xff] }
 0x211   : > { %1157 = vmatpush.bf16.msrb.mxu0 %v1857_v34 }
 0x212   : > { %v661_v46 = vmax.f32 %v628_v42, 0.0 }
 0x214   : > { %v765_v50 = vpop.f32.mrf.mxu2  ;;  %v694_v49 = vpack.c.bf16 %v661_v46, %v660_v45 }
 0x215   : > { %v766_v51 = vadd.f32 %v765_v50, %v2485_v13  ;;  %v1972_v56 = vpop.eup %1971 }
 0x217   : > { %1973 = vtanh.f32 %v766_v51 }
 0x219   : > { %807 = vmatmul.bf16.gmra.mxu2 %v690_v52 }
 0x21c   : > { %v768_v57 = vpop.f32.mrf.mxu2 }
 0x21d   : > { %v1974_v58 = vpop.eup %1973  ;;  %v769_v63 = vadd.f32 %v768_v57, %v2485_v13 }
 0x21e   : > { %v884_v59 = vpack.c.bf16 %v1974_v58, %v1972_v56 }
 0x21f   : > { %1975 = vtanh.f32 %v769_v63 }
 0x220   : > { %965 = vmatmul.bf16.gmra.mxu3 %v884_v59 }
 0x224   : > { %v770_v3 = vpop.f32.mrf.mxu2 }
 0x225   : > { %v771_v4 = vadd.f32 %v770_v3, %v2485_v13  ;;  %v1976_v6 = vpop.eup %1975 }
 0x227   : > { %1977 = vtanh.f32 %v771_v4 }
 0x229   : > { %812 = vmatmul.bf16.gmra.mxu2 %v691_v5 }
 0x22c   : > { %v773_v7 = vpop.f32.mrf.mxu2 }
 0x22d   : > { %v1978_v8 = vpop.eup %1977  ;;  %v774_v15 = vadd.f32 %v773_v7, %v2485_v13 }
 0x22e   : > { %v885_v10 = vpack.c.bf16 %v1978_v8, %v1976_v6  ;;  %v1872_v6 = vld [vmem:[#allocation5 + $0x178] sm:$0xff] }
 0x22f   : > { %1979 = vtanh.f32 %v774_v15  ;;  %1353 = vmatpush.bf16.msrb.mxu1 %v1872_v6 }
 0x230   : > { %970 = vmatmul.bf16.gmra.mxu3 %v885_v10 }
 0x234   : > { %v775_v18 = vpop.f32.mrf.mxu2 }
 0x235   : > { %v776_v19 = vadd.f32 %v775_v18, %v2485_v13  ;;  %v1980_v22 = vpop.eup %1979 }
 0x237   : > { %1981 = vtanh.f32 %v776_v19 }
 0x239   : > { %817 = vmatmul.bf16.gmra.mxu2 %v692_v20 }
 0x23c   : > { %v778_v23 = vpop.f32.mrf.mxu2 }
 0x23d   : > { %v1982_v24 = vpop.eup %1981  ;;  %v779_v30 = vadd.f32 %v778_v23, %v2485_v13 }
 0x23e   : > { %v886_v25 = vpack.c.bf16 %v1982_v24, %v1980_v22  ;;  %v1871_v22 = vld [vmem:[#allocation5 + $0x170] sm:$0xff] }
 0x23f   : > { %1983 = vtanh.f32 %v779_v30  ;;  %1354 = vmatpush.bf16.msrb.mxu1 %v1871_v22 }
 0x240   : > { %975 = vmatmul.bf16.gmra.mxu3 %v886_v25 }
 0x244   : > { %v780_v33 = vpop.f32.mrf.mxu2 }
 0x245   : > { %v781_v35 = vadd.f32 %v780_v33, %v2485_v13  ;;  %v1984_v37 = vpop.eup %1983 }
 0x247   : > { %1985 = vtanh.f32 %v781_v35 }
 0x249   : > { %822 = vmatmul.bf16.gmra.mxu2 %v693_v36 }
 0x24c   : > { %v783_v38 = vpop.f32.mrf.mxu2 }
 0x24d   : > { %v1986_v39 = vpop.eup %1985  ;;  %v784_v44 = vadd.f32 %v783_v38, %v2485_v13 }
 0x24e   : > { %v887_v40 = vpack.c.bf16 %v1986_v39, %v1984_v37  ;;  %v1870_v37 = vld [vmem:[#allocation5 + $0x168] sm:$0xff] }
 0x24f   : > { %1987 = vtanh.f32 %v784_v44  ;;  %1355 = vmatpush.bf16.msrb.mxu1 %v1870_v37 }
 0x250   : > { %980 = vmatmul.bf16.gmra.mxu3 %v887_v40 }
 0x254   : > { %v785_v47 = vpop.f32.mrf.mxu2 }
 0x255   : > { %v786_v48 = vadd.f32 %v785_v47, %v2485_v13  ;;  %v1988_v50 = vpop.eup %1987 }
 0x257   : > { %1989 = vtanh.f32 %v786_v48 }
 0x259   : > { %827 = vmatmul.bf16.gmra.mxu2 %v694_v49 }
 0x25c   : > { %v788_v51 = vpop.f32.mrf.mxu2 }
 0x25d   : > { %v1990_v52 = vpop.eup %1989  ;;  %v789_v56 = vadd.f32 %v788_v51, %v2485_v13 }
 0x25e   : > { %v888_v54 = vpack.c.bf16 %v1990_v52, %v1988_v50  ;;  %v1869_v52 = vld [vmem:[#allocation5 + $0x160] sm:$0xff] }
 0x25f   : > { %1991 = vtanh.f32 %v789_v56  ;;  %1356 = vmatpush.bf16.msrb.mxu1 %v1869_v52 }
 0x260   : > { %985 = vmatmul.bf16.gmra.mxu3 %v888_v54 }
 0x264   : > { %v790_v57 = vpop.f32.mrf.mxu2 }
 0x265   : > { %v791_v58 = vadd.f32 %v790_v57, %v2485_v13  ;;  %v1992_v59 = vpop.eup %1991 }
 0x267   : > { %1993 = vtanh.f32 %v791_v58 }
 0x26c   : > { %v793_v60 = vpop.f32.mrf.mxu2 }
 0x26d   : > { %v1994_v61 = vpop.eup %1993  ;;  %v794_v63 = vadd.f32 %v793_v60, %v2485_v13 }
 0x26e   : > { %v889_v62 = vpack.c.bf16 %v1994_v61, %v1992_v59 }
 0x26f   : > { %1995 = vtanh.f32 %v794_v63 }
 0x270   : > { %990 = vmatmul.bf16.gmra.mxu3 %v889_v62 }
 0x274   : > { %v795_v0 = vpop.f32.mrf.mxu2 }
 0x275   : > { %v796_v1 = vadd.f32 %v795_v0, %v2485_v13  ;;  %v1996_v2 = vpop.eup %1995 }
 0x277   : > { %1997 = vtanh.f32 %v796_v1 }
 0x27c   : > { %v798_v3 = vpop.f32.mrf.mxu2 }
 0x27d   : > { %v1998_v4 = vpop.eup %1997  ;;  %v799_v7 = vadd.f32 %v798_v3, %v2485_v13 }
 0x27e   : > { %v890_v5 = vpack.c.bf16 %v1998_v4, %v1996_v2  ;;  %v1868_v4 = vld [vmem:[#allocation5 + $0x158] sm:$0xff] }
 0x27f   : > { %1999 = vtanh.f32 %v799_v7  ;;  %1357 = vmatpush.bf16.msrb.mxu1 %v1868_v4 }
 0x280   : > { %995 = vmatmul.bf16.gmra.mxu3 %v890_v5 }
 0x283   : > { %v956_v8 = vpop.f32.mrf.mxu3 }
 0x284   : > { %v800_v9 = vpop.f32.mrf.mxu2  ;;  %v957_v12 = vadd.f32 %v956_v8, %v2522_v11 }
 0x285   : > { %v801_v10 = vadd.f32 %v800_v9, %v2485_v13  ;;  %v2000_v15 = vpop.eup %1999 }
 0x286   : > { %v1036_v19 = vmax.f32 %v957_v12, 0.0 }
 0x287   : > { %2001 = vtanh.f32 %v801_v10 }
 0x28b   : > { %v958_v14 = vpop.f32.mrf.mxu3 }
 0x28c   : > { %v959_v16 = vadd.f32 %v958_v14, %v2522_v11  ;;  %v803_v17 = vpop.f32.mrf.mxu2 }
 0x28d   : > { %v2002_v18 = vpop.eup %2001  ;;  %v804_v24 = vadd.f32 %v803_v17, %v2485_v13 }
 0x28e   : > { %v1037_v20 = vmax.f32 %v959_v16, 0.0  ;;  %v891_v21 = vpack.c.bf16 %v2002_v18, %v2000_v15 }
 0x28f   : > { %2003 = vtanh.f32 %v804_v24 }
 0x290   : > { %1000 = vmatmul.bf16.gmra.mxu3 %v891_v21  ;;  %v1085_v23 = vpack.c.bf16 %v1037_v20, %v1036_v19  ;;  %v1867_v21 = vld [vmem:[#allocation5 + $0x150] sm:$0xff] }
 0x291   : > { %1358 = vmatpush.bf16.msrb.mxu1 %v1867_v21 }
 0x292   : > { %1158 = vmatmul.bf16.vlgmr.msrb.gmra.mxu0 %v1085_v23 }
 0x293   : > { %v961_v53 = vpop.f32.mrf.mxu3 }
 0x294   : > { %v805_v25 = vpop.f32.mrf.mxu2  ;;  %v962_v27 = vadd.f32 %v961_v53, %v2522_v11 }
 0x295   : > { %v806_v26 = vadd.f32 %v805_v25, %v2485_v13  ;;  %v2004_v29 = vpop.eup %2003 }
 0x296   : > { %v1038_v33 = vmax.f32 %v962_v27, 0.0 }
 0x297   : > { %2005 = vtanh.f32 %v806_v26 }
 0x29b   : > { %v963_v28 = vpop.f32.mrf.mxu3 }
 0x29c   : > { %v964_v30 = vadd.f32 %v963_v28, %v2522_v11  ;;  %v808_v31 = vpop.f32.mrf.mxu2 }
 0x29d   : > { %v2006_v32 = vpop.eup %2005  ;;  %v809_v38 = vadd.f32 %v808_v31, %v2485_v13 }
 0x29e   : > { %v1039_v35 = vmax.f32 %v964_v30, 0.0  ;;  %v892_v36 = vpack.c.bf16 %v2006_v32, %v2004_v29 }
 0x29f   : > { %2007 = vtanh.f32 %v809_v38 }
 0x2a0   : > { %1005 = vmatmul.bf16.gmra.mxu3 %v892_v36  ;;  %v1086_v55 = vpack.c.bf16 %v1039_v35, %v1038_v33  ;;  %v1866_v36 = vld [vmem:[#allocation5 + $0x148] sm:$0xff] }
 0x2a1   : > { %1359 = vmatpush.bf16.msrb.mxu1 %v1866_v36 }
 0x2a2   : > { %1163 = vmatmul.bf16.gmra.mxu0 %v1086_v55 }
 0x2a3   : > { %v966_v39 = vpop.f32.mrf.mxu3 }
 0x2a4   : > { %v810_v40 = vpop.f32.mrf.mxu2  ;;  %v967_v42 = vadd.f32 %v966_v39, %v2522_v11 }
 0x2a5   : > { %v811_v41 = vadd.f32 %v810_v40, %v2485_v13  ;;  %v2008_v44 = vpop.eup %2007 }
 0x2a6   : > { %v1040_v48 = vmax.f32 %v967_v42, 0.0 }
 0x2a7   : > { %2009 = vtanh.f32 %v811_v41 }
 0x2ab   : > { %v968_v43 = vpop.f32.mrf.mxu3 }
 0x2ac   : > { %v969_v45 = vadd.f32 %v968_v43, %v2522_v11  ;;  %v813_v46 = vpop.f32.mrf.mxu2 }
 0x2ad   : > { %v2010_v47 = vpop.eup %2009  ;;  %v814_v54 = vadd.f32 %v813_v46, %v2485_v13 }
 0x2ae   : > { %v1041_v49 = vmax.f32 %v969_v45, 0.0  ;;  %v893_v50 = vpack.c.bf16 %v2010_v47, %v2008_v44 }
 0x2af   : > { %2011 = vtanh.f32 %v814_v54 }
 0x2b0   : > { %1010 = vmatmul.bf16.gmra.mxu3 %v893_v50  ;;  %v1087_v51 = vpack.c.bf16 %v1041_v49, %v1040_v48  ;;  %v1865_v49 = vld [vmem:[#allocation5 + $0x140] sm:$0xff] }
 0x2b1   : > { %1360 = vmatpush.bf16.msrb.mxu1 %v1865_v49 }
 0x2b2   : > { %1168 = vmatmul.bf16.gmra.mxu0 %v1087_v51 }
 0x2b3   : > { %v971_v34 = vpop.f32.mrf.mxu3 }
 0x2b4   : > { %v815_v56 = vpop.f32.mrf.mxu2  ;;  %v972_v58 = vadd.f32 %v971_v34, %v2522_v11 }
 0x2b5   : > { %v816_v57 = vadd.f32 %v815_v56, %v2485_v13  ;;  %v2012_v60 = vpop.eup %2011 }
 0x2b6   : > { %v1042_v0 = vmax.f32 %v972_v58, 0.0 }
 0x2b7   : > { %2013 = vtanh.f32 %v816_v57 }
 0x2bb   : > { %v973_v59 = vpop.f32.mrf.mxu3 }
 0x2bc   : > { %v974_v61 = vadd.f32 %v973_v59, %v2522_v11  ;;  %v818_v62 = vpop.f32.mrf.mxu2 }
 0x2bd   : > { %v2014_v63 = vpop.eup %2013  ;;  %v819_v5 = vadd.f32 %v818_v62, %v2485_v13 }
 0x2be   : > { %v1043_v1 = vmax.f32 %v974_v61, 0.0  ;;  %v894_v2 = vpack.c.bf16 %v2014_v63, %v2012_v60 }
 0x2bf   : > { %2015 = vtanh.f32 %v819_v5 }
 0x2c0   : > { %1015 = vmatmul.bf16.gmra.mxu3 %v894_v2  ;;  %v1088_v3 = vpack.c.bf16 %v1043_v1, %v1042_v0  ;;  %v2554_v1 = vld [vmem:[#allocation7] sm:$0xff] }
 0x2c1   : > { %v2557_v2 = vperm.slane %v2554_v1, 4 }
 0x2c2   : > { %1173 = vmatmul.bf16.gmra.mxu0 %v1088_v3 }
 0x2c3   : > { %v976_v6 = vpop.f32.mrf.mxu3 }
 0x2c4   : > { %v820_v7 = vpop.f32.mrf.mxu2  ;;  %v977_v9 = vadd.f32 %v976_v6, %v2522_v11 }
 0x2c5   : > { %v821_v8 = vadd.f32 %v820_v7, %v2485_v13  ;;  %v2016_v12 = vpop.eup %2015 }
 0x2c6   : > { %v1044_v17 = vmax.f32 %v977_v9, 0.0 }
 0x2c7   : > { %2017 = vtanh.f32 %v821_v8 }
 0x2cb   : > { %v978_v10 = vpop.f32.mrf.mxu3 }
 0x2cc   : > { %v979_v14 = vadd.f32 %v978_v10, %v2522_v11  ;;  %v823_v15 = vpop.f32.mrf.mxu2 }
 0x2cd   : > { %v2018_v16 = vpop.eup %2017  ;;  %v824_v22 = vadd.f32 %v823_v15, %v2485_v13 }
 0x2ce   : > { %v1045_v18 = vmax.f32 %v979_v14, 0.0  ;;  %v895_v19 = vpack.c.bf16 %v2018_v16, %v2016_v12 }
 0x2cf   : > { %2019 = vtanh.f32 %v824_v22 }
 0x2d0   : > { %v1089_v20 = vpack.c.bf16 %v1045_v18, %v1044_v17  ;;  %1020 = vmatmul.bf16.gmra.mxu3 %v895_v19 }
 0x2d2   : > { %1178 = vmatmul.bf16.gmra.mxu0 %v1089_v20 }
 0x2d3   : > { %v981_v23 = vpop.f32.mrf.mxu3 }
 0x2d4   : > { %v825_v24 = vpop.f32.mrf.mxu2  ;;  %v982_v25 = vadd.f32 %v981_v23, %v2522_v11 }
 0x2d5   : > { %v826_v53 = vadd.f32 %v825_v24, %v2485_v13  ;;  %v2020_v27 = vpop.eup %2019 }
 0x2d6   : > { %v1046_v31 = vmax.f32 %v982_v25, 0.0 }
 0x2d7   : > { %2021 = vtanh.f32 %v826_v53 }
 0x2db   : > { %v983_v26 = vpop.f32.mrf.mxu3 }
 0x2dc   : > { %v984_v28 = vadd.f32 %v983_v26, %v2522_v11  ;;  %v828_v29 = vpop.f32.mrf.mxu2 }
 0x2dd   : > { %v2022_v30 = vpop.eup %2021  ;;  %v829_v37 = vadd.f32 %v828_v29, %v2485_v13 }
 0x2de   : > { %v1047_v32 = vmax.f32 %v984_v28, 0.0  ;;  %v896_v33 = vpack.c.bf16 %v2022_v30, %v2020_v27 }
 0x2df   : > { %2023 = vtanh.f32 %v829_v37 }
 0x2e0   : > { %v1090_v35 = vpack.c.bf16 %v1047_v32, %v1046_v31  ;;  %1025 = vmatmul.bf16.gmra.mxu3 %v896_v33 }
 0x2e2   : > { %1183 = vmatmul.bf16.gmra.mxu0 %v1090_v35 }
 0x2e3   : > { %v986_v55 = vpop.f32.mrf.mxu3 }
 0x2e4   : > { %v830_v38 = vpop.f32.mrf.mxu2  ;;  %v987_v40 = vadd.f32 %v986_v55, %v2522_v11 }
 0x2e5   : > { %v831_v39 = vadd.f32 %v830_v38, %v2485_v13  ;;  %v2024_v42 = vpop.eup %2023 }
 0x2e6   : > { %v1048_v45 = vmax.f32 %v987_v40, 0.0 }
 0x2e7   : > { %2025 = vtanh.f32 %v831_v39 }
 0x2eb   : > { %v988_v41 = vpop.f32.mrf.mxu3 }
 0x2ec   : > { %v989_v43 = vadd.f32 %v988_v41, %v2522_v11 }
 0x2ed   : > { %v2026_v44 = vpop.eup %2025 }
 0x2ee   : > { %v1049_v46 = vmax.f32 %v989_v43, 0.0  ;;  %v897_v47 = vpack.c.bf16 %v2026_v44, %v2024_v42 }
 0x2f0   : > { %v1091_v48 = vpack.c.bf16 %v1049_v46, %v1048_v45  ;;  %1030 = vmatmul.bf16.gmra.mxu3 %v897_v47 }
 0x2f2   : > { %1188 = vmatmul.bf16.gmra.mxu0 %v1091_v48 }
 0x2f3   : > { %v991_v50 = vpop.f32.mrf.mxu3 }
 0x2f4   : > { %v992_v13 = vadd.f32 %v991_v50, %v2522_v11 }
 0x2f6   : > { %v1050_v54 = vmax.f32 %v992_v13, 0.0 }
 0x2fb   : > { %v993_v51 = vpop.f32.mrf.mxu3 }
 0x2fc   : > { %v994_v52 = vadd.f32 %v993_v51, %v2522_v11 }
 0x2fe   : > { %v1051_v34 = vmax.f32 %v994_v52, 0.0 }
 0x300   : > { %v1092_v56 = vpack.c.bf16 %v1051_v34, %v1050_v54 }
 0x302   : > { %1193 = vmatmul.bf16.gmra.mxu0 %v1092_v56 }
 0x303   : > { %v996_v57 = vpop.f32.mrf.mxu3 }
 0x304   : > { %v997_v58 = vadd.f32 %v996_v57, %v2522_v11 }
 0x306   : > { %v1052_v61 = vmax.f32 %v997_v58, 0.0 }
 0x30b   : > { %v998_v59 = vpop.f32.mrf.mxu3 }
 0x30c   : > { %v999_v60 = vadd.f32 %v998_v59, %v2522_v11 }
 0x30e   : > { %v1053_v62 = vmax.f32 %v999_v60, 0.0 }
 0x30f   : > { %v1159_v63 = vpop.f32.mrf.mxu0 }
 0x310   : > { %v1093_v0 = vpack.c.bf16 %v1053_v62, %v1052_v61  ;;  %v1160_v4 = vadd.f32 %v1159_v63, %v2557_v2 }
 0x312   : > { %1198 = vmatmul.bf16.gmra.mxu0 %v1093_v0  ;;  %v1239_v7 = vmax.f32 %v1160_v4, 0.0 }
 0x313   : > { %v1001_v3 = vpop.f32.mrf.mxu3 }
 0x314   : > { %v1002_v8 = vadd.f32 %v1001_v3, %v2522_v11 }
 0x316   : > { %v1054_v15 = vmax.f32 %v1002_v8, 0.0 }
 0x317   : > { %v1161_v5 = vpop.f32.mrf.mxu0 }
 0x318   : > { %v1162_v6 = vadd.f32 %v1161_v5, %v2557_v2 }
 0x31a   : > { %v1240_v9 = vmax.f32 %v1162_v6, 0.0 }
 0x31b   : > { %v1003_v10 = vpop.f32.mrf.mxu3 }
 0x31c   : > { %v1004_v12 = vadd.f32 %v1003_v10, %v2522_v11  ;;  %v1288_v14 = vpack.c.bf16 %v1240_v9, %v1239_v7 }
 0x31e   : > { %v1055_v16 = vmax.f32 %v1004_v12, 0.0  ;;  %1361 = vmatmul.bf16.vlgmr.msrb.gmra.mxu1 %v1288_v14 }
 0x31f   : > { %v1164_v17 = vpop.f32.mrf.mxu0 }
 0x320   : > { %v1094_v18 = vpack.c.bf16 %v1055_v16, %v1054_v15  ;;  %v1165_v20 = vadd.f32 %v1164_v17, %v2557_v2 }
 0x322   : > { %1203 = vmatmul.bf16.gmra.mxu0 %v1094_v18  ;;  %v1241_v23 = vmax.f32 %v1165_v20, 0.0 }
 0x323   : > { %v1006_v19 = vpop.f32.mrf.mxu3 }
 0x324   : > { %v1007_v24 = vadd.f32 %v1006_v19, %v2522_v11 }
 0x326   : > { %v1056_v28 = vmax.f32 %v1007_v24, 0.0 }
 0x327   : > { %v1166_v21 = vpop.f32.mrf.mxu0 }
 0x328   : > { %v1167_v22 = vadd.f32 %v1166_v21, %v2557_v2 }
 0x32a   : > { %v1242_v53 = vmax.f32 %v1167_v22, 0.0 }
 0x32b   : > { %v1008_v25 = vpop.f32.mrf.mxu3 }
 0x32c   : > { %v1009_v26 = vadd.f32 %v1008_v25, %v2522_v11  ;;  %v1289_v27 = vpack.c.bf16 %v1242_v53, %v1241_v23 }
 0x32e   : > { %v1057_v29 = vmax.f32 %v1009_v26, 0.0  ;;  %1366 = vmatmul.bf16.gmra.mxu1 %v1289_v27 }
 0x32f   : > { %v1169_v30 = vpop.f32.mrf.mxu0 }
 0x330   : > { %v1095_v31 = vpack.c.bf16 %v1057_v29, %v1056_v28  ;;  %v1170_v33 = vadd.f32 %v1169_v30, %v2557_v2 }
 0x332   : > { %1208 = vmatmul.bf16.gmra.mxu0 %v1095_v31  ;;  %v1243_v37 = vmax.f32 %v1170_v33, 0.0 }
 0x333   : > { %v1011_v32 = vpop.f32.mrf.mxu3 }
 0x334   : > { %v1012_v55 = vadd.f32 %v1011_v32, %v2522_v11 }
 0x336   : > { %v1058_v42 = vmax.f32 %v1012_v55, 0.0 }
 0x337   : > { %v1171_v35 = vpop.f32.mrf.mxu0 }
 0x338   : > { %v1172_v36 = vadd.f32 %v1171_v35, %v2557_v2 }
 0x33a   : > { %v1244_v38 = vmax.f32 %v1172_v36, 0.0 }
 0x33b   : > { %v1013_v39 = vpop.f32.mrf.mxu3 }
 0x33c   : > { %v1014_v40 = vadd.f32 %v1013_v39, %v2522_v11  ;;  %v1290_v41 = vpack.c.bf16 %v1244_v38, %v1243_v37 }
 0x33e   : > { %v1059_v43 = vmax.f32 %v1014_v40, 0.0  ;;  %1371 = vmatmul.bf16.gmra.mxu1 %v1290_v41 }
 0x33f   : > { %v1174_v44 = vpop.f32.mrf.mxu0 }
 0x340   : > { %v1096_v45 = vpack.c.bf16 %v1059_v43, %v1058_v42  ;;  %v1175_v47 = vadd.f32 %v1174_v44, %v2557_v2 }
 0x342   : > { %1213 = vmatmul.bf16.gmra.mxu0 %v1096_v45  ;;  %v1245_v50 = vmax.f32 %v1175_v47, 0.0 }
 0x343   : > { %v1016_v46 = vpop.f32.mrf.mxu3 }
 0x344   : > { %v1017_v13 = vadd.f32 %v1016_v46, %v2522_v11 }
 0x346   : > { %v1060_v56 = vmax.f32 %v1017_v13, 0.0 }
 0x347   : > { %v1176_v48 = vpop.f32.mrf.mxu0 }
 0x348   : > { %v1177_v49 = vadd.f32 %v1176_v48, %v2557_v2 }
 0x34a   : > { %v1246_v51 = vmax.f32 %v1177_v49, 0.0 }
 0x34b   : > { %v1018_v52 = vpop.f32.mrf.mxu3 }
 0x34c   : > { %v1019_v54 = vadd.f32 %v1018_v52, %v2522_v11  ;;  %v1291_v34 = vpack.c.bf16 %v1246_v51, %v1245_v50  ;;  %v2592_v50 = vperm.slane %v2554_v1, 5 }
 0x34e   : > { %v1061_v57 = vmax.f32 %v1019_v54, 0.0  ;;  %1376 = vmatmul.bf16.gmra.mxu1 %v1291_v34 }
 0x34f   : > { %v1179_v58 = vpop.f32.mrf.mxu0 }
 0x350   : > { %v1097_v59 = vpack.c.bf16 %v1061_v57, %v1060_v56  ;;  %v1180_v61 = vadd.f32 %v1179_v58, %v2557_v2 }
 0x352   : > { %1218 = vmatmul.bf16.gmra.mxu0 %v1097_v59  ;;  %v1247_v0 = vmax.f32 %v1180_v61, 0.0 }
 0x353   : > { %v1021_v60 = vpop.f32.mrf.mxu3 }
 0x354   : > { %v1022_v3 = vadd.f32 %v1021_v60, %v2522_v11 }
 0x356   : > { %v1062_v8 = vmax.f32 %v1022_v3, 0.0 }
 0x357   : > { %v1181_v62 = vpop.f32.mrf.mxu0 }
 0x358   : > { %v1182_v63 = vadd.f32 %v1181_v62, %v2557_v2 }
 0x35a   : > { %v1248_v4 = vmax.f32 %v1182_v63, 0.0 }
 0x35b   : > { %v1023_v5 = vpop.f32.mrf.mxu3 }
 0x35c   : > { %v1292_v6 = vpack.c.bf16 %v1248_v4, %v1247_v0  ;;  %v1024_v7 = vadd.f32 %v1023_v5, %v2522_v11 }
 0x35e   : > { %v1063_v9 = vmax.f32 %v1024_v7, 0.0  ;;  %1381 = vmatmul.bf16.gmra.mxu1 %v1292_v6 }
 0x35f   : > { %v1184_v10 = vpop.f32.mrf.mxu0 }
 0x360   : > { %v1098_v12 = vpack.c.bf16 %v1063_v9, %v1062_v8  ;;  %v1185_v15 = vadd.f32 %v1184_v10, %v2557_v2 }
 0x362   : > { %1223 = vmatmul.bf16.gmra.mxu0 %v1098_v12  ;;  %v1249_v18 = vmax.f32 %v1185_v15, 0.0 }
 0x363   : > { %v1026_v14 = vpop.f32.mrf.mxu3 }
 0x364   : > { %v1027_v19 = vadd.f32 %v1026_v14, %v2522_v11 }
 0x366   : > { %v1064_v24 = vmax.f32 %v1027_v19, 0.0 }
 0x367   : > { %v1186_v16 = vpop.f32.mrf.mxu0 }
 0x368   : > { %v1187_v17 = vadd.f32 %v1186_v16, %v2557_v2 }
 0x36a   : > { %v1250_v20 = vmax.f32 %v1187_v17, 0.0 }
 0x36b   : > { %v1028_v21 = vpop.f32.mrf.mxu3 }
 0x36c   : > { %v1293_v22 = vpack.c.bf16 %v1250_v20, %v1249_v18  ;;  %v1029_v23 = vadd.f32 %v1028_v21, %v2522_v11 }
 0x36e   : > { %v1065_v53 = vmax.f32 %v1029_v23, 0.0  ;;  %1386 = vmatmul.bf16.gmra.mxu1 %v1293_v22 }
 0x36f   : > { %v1189_v25 = vpop.f32.mrf.mxu0 }
 0x370   : > { %v1099_v26 = vpack.c.bf16 %v1065_v53, %v1064_v24  ;;  %v1190_v28 = vadd.f32 %v1189_v25, %v2557_v2 }
 0x372   : > { %1228 = vmatmul.bf16.gmra.mxu0 %v1099_v26  ;;  %v1251_v31 = vmax.f32 %v1190_v28, 0.0 }
 0x373   : > { %v1031_v27 = vpop.f32.mrf.mxu3 }
 0x374   : > { %v1032_v32 = vadd.f32 %v1031_v27, %v2522_v11 }
 0x376   : > { %v1066_v55 = vmax.f32 %v1032_v32, 0.0 }
 0x377   : > { %v1191_v29 = vpop.f32.mrf.mxu0 }
 0x378   : > { %v1192_v30 = vadd.f32 %v1191_v29, %v2557_v2 }
 0x37a   : > { %v1252_v33 = vmax.f32 %v1192_v30, 0.0 }
 0x37b   : > { %v1033_v35 = vpop.f32.mrf.mxu3 }
 0x37c   : > { %v1294_v36 = vpack.c.bf16 %v1252_v33, %v1251_v31  ;;  %v1034_v37 = vadd.f32 %v1033_v35, %v2522_v11 }
 0x37e   : > { %v1067_v38 = vmax.f32 %v1034_v37, 0.0  ;;  %1391 = vmatmul.bf16.gmra.mxu1 %v1294_v36 }
 0x37f   : > { %v1194_v39 = vpop.f32.mrf.mxu0 }
 0x380   : > { %v1100_v40 = vpack.c.bf16 %v1067_v38, %v1066_v55  ;;  %v1195_v41 = vadd.f32 %v1194_v39, %v2557_v2 }
 0x382   : > { %1233 = vmatmul.bf16.gmra.mxu0 %v1100_v40  ;;  %v1253_v44 = vmax.f32 %v1195_v41, 0.0 }
 0x387   : > { %v1196_v42 = vpop.f32.mrf.mxu0 }
 0x388   : > { %v1197_v43 = vadd.f32 %v1196_v42, %v2557_v2 }
 0x38a   : > { %v1254_v45 = vmax.f32 %v1197_v43, 0.0 }
 0x38c   : > { %v1295_v46 = vpack.c.bf16 %v1254_v45, %v1253_v44 }
 0x38e   : > { %1396 = vmatmul.bf16.gmra.mxu1 %v1295_v46 }
 0x38f   : > { %v1199_v47 = vpop.f32.mrf.mxu0 }
 0x390   : > { %v1200_v48 = vadd.f32 %v1199_v47, %v2557_v2 }
 0x392   : > { %v1255_v13 = vmax.f32 %v1200_v48, 0.0 }
 0x397   : > { %v1201_v11 = vpop.f32.mrf.mxu0 }
 0x398   : > { %v1202_v49 = vadd.f32 %v1201_v11, %v2557_v2 }
 0x39a   : > { %v1256_v51 = vmax.f32 %v1202_v49, 0.0 }
 0x39b   : > { %v1362_v52 = vpop.f32.mrf.mxu1 }
 0x39c   : > { %v1296_v54 = vpack.c.bf16 %v1256_v51, %v1255_v13  ;;  %v1363_v34 = vadd.f32 %v1362_v52, %v2592_v50 }
 0x39e   : > { %2027 = vtanh.f32 %v1363_v34  ;;  %1401 = vmatmul.bf16.gmra.mxu1 %v1296_v54 }
 0x39f   : > { %v1204_v56 = vpop.f32.mrf.mxu0 }
 0x3a0   : > { %v1205_v1 = vadd.f32 %v1204_v56, %v2557_v2 }
 0x3a2   : > { %v1257_v62 = vmax.f32 %v1205_v1, 0.0 }
 0x3a3   : > { %v1364_v57 = vpop.f32.mrf.mxu1 }
 0x3a4   : > { %v2028_v58 = vpop.eup %2027  ;;  %v1365_v59 = vadd.f32 %v1364_v57, %v2592_v50 }
 0x3a5   : > { %1474 = vst [vmem:[%s2598_s18] sm:$0xff] %v2028_v58 }
 0x3a6   : > { %2029 = vtanh.f32 %v1365_v59 }
 0x3a7   : > { %v1206_v60 = vpop.f32.mrf.mxu0 }
 0x3a8   : > { %v1207_v61 = vadd.f32 %v1206_v60, %v2557_v2 }
 0x3aa   : > { %v1258_v63 = vmax.f32 %v1207_v61, 0.0 }
 0x3ab   : > { %v1367_v0 = vpop.f32.mrf.mxu1 }
 0x3ac   : > { %v2030_v3 = vpop.eup %2029  ;;  %v1297_v4 = vpack.c.bf16 %v1258_v63, %v1257_v62  ;;  %v1368_v5 = vadd.f32 %v1367_v0, %v2592_v50 }
 0x3ad   : > { %1475 = vst [vmem:[%s2598_s18 + $0x8] sm:$0xff] %v2030_v3 }
 0x3ae   : > { %2031 = vtanh.f32 %v1368_v5  ;;  %1406 = vmatmul.bf16.gmra.mxu1 %v1297_v4 }
 0x3af   : > { %v1209_v6 = vpop.f32.mrf.mxu0 }
 0x3b0   : > { %v1210_v10 = vadd.f32 %v1209_v6, %v2557_v2 }
 0x3b2   : > { %v1259_v15 = vmax.f32 %v1210_v10, 0.0 }
 0x3b3   : > { %v1369_v7 = vpop.f32.mrf.mxu1 }
 0x3b4   : > { %v2032_v8 = vpop.eup %2031  ;;  %v1370_v9 = vadd.f32 %v1369_v7, %v2592_v50 }
 0x3b5   : > { %1476 = vst [vmem:[%s2598_s18 + $0x10] sm:$0xff] %v2032_v8 }
 0x3b6   : > { %2033 = vtanh.f32 %v1370_v9 }
 0x3b7   : > { %v1211_v12 = vpop.f32.mrf.mxu0 }
 0x3b8   : > { %v1212_v14 = vadd.f32 %v1211_v12, %v2557_v2 }
 0x3ba   : > { %v1260_v16 = vmax.f32 %v1212_v14, 0.0 }
 0x3bb   : > { %v1372_v17 = vpop.f32.mrf.mxu1 }
 0x3bc   : > { %v2034_v18 = vpop.eup %2033  ;;  %v1298_v19 = vpack.c.bf16 %v1260_v16, %v1259_v15  ;;  %v1373_v20 = vadd.f32 %v1372_v17, %v2592_v50 }
 0x3bd   : > { %1477 = vst [vmem:[%s2598_s18 + $0x18] sm:$0xff] %v2034_v18 }
 0x3be   : > { %2035 = vtanh.f32 %v1373_v20  ;;  %1411 = vmatmul.bf16.gmra.mxu1 %v1298_v19 }
 0x3bf   : > { %v1214_v21 = vpop.f32.mrf.mxu0 }
 0x3c0   : > { %v1215_v53 = vadd.f32 %v1214_v21, %v2557_v2 }
 0x3c2   : > { %v1261_v27 = vmax.f32 %v1215_v53, 0.0 }
 0x3c3   : > { %v1374_v22 = vpop.f32.mrf.mxu1 }
 0x3c4   : > { %v2036_v23 = vpop.eup %2035  ;;  %v1375_v24 = vadd.f32 %v1374_v22, %v2592_v50 }
 0x3c5   : > { %1478 = vst [vmem:[%s2598_s18 + $0x20] sm:$0xff] %v2036_v23 }
 0x3c6   : > { %2037 = vtanh.f32 %v1375_v24 }
 0x3c7   : > { %v1216_v25 = vpop.f32.mrf.mxu0 }
 0x3c8   : > { %v1217_v26 = vadd.f32 %v1216_v25, %v2557_v2 }
 0x3ca   : > { %v1262_v28 = vmax.f32 %v1217_v26, 0.0 }
 0x3cb   : > { %v1377_v29 = vpop.f32.mrf.mxu1 }
 0x3cc   : > { %v2038_v30 = vpop.eup %2037  ;;  %v1299_v31 = vpack.c.bf16 %v1262_v28, %v1261_v27  ;;  %v1378_v32 = vadd.f32 %v1377_v29, %v2592_v50 }
 0x3cd   : > { %1479 = vst [vmem:[%s2598_s18 + $0x28] sm:$0xff] %v2038_v30 }
 0x3ce   : > { %2039 = vtanh.f32 %v1378_v32  ;;  %1416 = vmatmul.bf16.gmra.mxu1 %v1299_v31 }
 0x3cf   : > { %v1219_v33 = vpop.f32.mrf.mxu0 }
 0x3d0   : > { %v1220_v55 = vadd.f32 %v1219_v33, %v2557_v2 }
 0x3d2   : > { %v1263_v40 = vmax.f32 %v1220_v55, 0.0 }
 0x3d3   : > { %v1379_v35 = vpop.f32.mrf.mxu1 }
 0x3d4   : > { %v2040_v36 = vpop.eup %2039  ;;  %v1380_v37 = vadd.f32 %v1379_v35, %v2592_v50 }
 0x3d5   : > { %1480 = vst [vmem:[%s2598_s18 + $0x30] sm:$0xff] %v2040_v36 }
 0x3d6   : > { %2041 = vtanh.f32 %v1380_v37 }
 0x3d7   : > { %v1221_v38 = vpop.f32.mrf.mxu0 }
 0x3d8   : > { %v1222_v39 = vadd.f32 %v1221_v38, %v2557_v2 }
 0x3da   : > { %v1264_v41 = vmax.f32 %v1222_v39, 0.0 }
 0x3db   : > { %v1382_v42 = vpop.f32.mrf.mxu1 }
 0x3dc   : > { %v2042_v43 = vpop.eup %2041  ;;  %v1300_v44 = vpack.c.bf16 %v1264_v41, %v1263_v40  ;;  %v1383_v45 = vadd.f32 %v1382_v42, %v2592_v50 }
 0x3dd   : > { %1481 = vst [vmem:[%s2598_s18 + $0x38] sm:$0xff] %v2042_v43 }
 0x3de   : > { %2043 = vtanh.f32 %v1383_v45  ;;  %1421 = vmatmul.bf16.gmra.mxu1 %v1300_v44 }
 0x3df   : > { %v1224_v46 = vpop.f32.mrf.mxu0 }
 0x3e0   : > { %v1225_v49 = vadd.f32 %v1224_v46, %v2557_v2 }
 0x3e2   : > { %v1265_v52 = vmax.f32 %v1225_v49, 0.0 }
 0x3e3   : > { %v1384_v47 = vpop.f32.mrf.mxu1 }
 0x3e4   : > { %v2044_v48 = vpop.eup %2043  ;;  %v1385_v11 = vadd.f32 %v1384_v47, %v2592_v50 }
 0x3e5   : > { %1482 = vst [vmem:[%s2598_s18 + $0x40] sm:$0xff] %v2044_v48 }
 0x3e6   : > { %2045 = vtanh.f32 %v1385_v11 }
 0x3e7   : > { %v1226_v13 = vpop.f32.mrf.mxu0 }
 0x3e8   : > { %v1227_v51 = vadd.f32 %v1226_v13, %v2557_v2 }
 0x3ea   : > { %v1266_v54 = vmax.f32 %v1227_v51, 0.0 }
 0x3eb   : > { %v1387_v34 = vpop.f32.mrf.mxu1 }
 0x3ec   : > { %v2046_v56 = vpop.eup %2045  ;;  %v1301_v57 = vpack.c.bf16 %v1266_v54, %v1265_v52  ;;  %v1388_v58 = vadd.f32 %v1387_v34, %v2592_v50 }
 0x3ed   : > { %1483 = vst [vmem:[%s2598_s18 + $0x48] sm:$0xff] %v2046_v56 }
 0x3ee   : > { %2047 = vtanh.f32 %v1388_v58  ;;  %1426 = vmatmul.bf16.gmra.mxu1 %v1301_v57 }
 0x3ef   : > { %v1229_v59 = vpop.f32.mrf.mxu0 }
 0x3f0   : > { %v1230_v62 = vadd.f32 %v1229_v59, %v2557_v2 }
 0x3f2   : > { %v1267_v3 = vmax.f32 %v1230_v62, 0.0 }
 0x3f3   : > { %v1389_v1 = vpop.f32.mrf.mxu1 }
 0x3f4   : > { %v2048_v60 = vpop.eup %2047  ;;  %v1390_v61 = vadd.f32 %v1389_v1, %v2592_v50 }
 0x3f5   : > { %1484 = vst [vmem:[%s2598_s18 + $0x50] sm:$0xff] %v2048_v60 }
 0x3f6   : > { %2049 = vtanh.f32 %v1390_v61 }
 0x3f7   : > { %v1231_v63 = vpop.f32.mrf.mxu0 }
 0x3f8   : > { %v1232_v0 = vadd.f32 %v1231_v63, %v2557_v2 }
 0x3fa   : > { %v1268_v4 = vmax.f32 %v1232_v0, 0.0 }
 0x3fb   : > { %v1392_v5 = vpop.f32.mrf.mxu1 }
 0x3fc   : > { %v2050_v6 = vpop.eup %2049  ;;  %v1302_v7 = vpack.c.bf16 %v1268_v4, %v1267_v3  ;;  %v1393_v8 = vadd.f32 %v1392_v5, %v2592_v50 }
 0x3fd   : > { %1485 = vst [vmem:[%s2598_s18 + $0x58] sm:$0xff] %v2050_v6 }
 0x3fe   : > { %2051 = vtanh.f32 %v1393_v8  ;;  %1431 = vmatmul.bf16.gmra.mxu1 %v1302_v7 }
 0x3ff   : > { %v1234_v9 = vpop.f32.mrf.mxu0 }
 0x400   : > { %v1235_v15 = vadd.f32 %v1234_v9, %v2557_v2 }
 0x402   : > { %v1269_v18 = vmax.f32 %v1235_v15, 0.0 }
 0x403   : > { %v1394_v10 = vpop.f32.mrf.mxu1 }
 0x404   : > { %v2052_v12 = vpop.eup %2051  ;;  %v1395_v14 = vadd.f32 %v1394_v10, %v2592_v50 }
 0x405   : > { %1486 = vst [vmem:[%s2598_s18 + $0x60] sm:$0xff] %v2052_v12 }
 0x406   : > { %2053 = vtanh.f32 %v1395_v14 }
 0x407   : > { %v1236_v16 = vpop.f32.mrf.mxu0 }
 0x408   : > { %v1237_v17 = vadd.f32 %v1236_v16, %v2557_v2 }
 0x40a   : > { %v1270_v19 = vmax.f32 %v1237_v17, 0.0 }
 0x40b   : > { %v1397_v20 = vpop.f32.mrf.mxu1 }
 0x40c   : > { %v2054_v21 = vpop.eup %2053  ;;  %v1303_v22 = vpack.c.bf16 %v1270_v19, %v1269_v18  ;;  %v1398_v23 = vadd.f32 %v1397_v20, %v2592_v50 }
 0x40d   : > { %1487 = vst [vmem:[%s2598_s18 + $0x68] sm:$0xff] %v2054_v21 }
 0x40e   : > { %2055 = vtanh.f32 %v1398_v23  ;;  %1436 = vmatmul.bf16.gmra.mxu1 %v1303_v22 }
 0x413   : > { %v1399_v24 = vpop.f32.mrf.mxu1 }
 0x414   : > { %v2056_v53 = vpop.eup %2055  ;;  %v1400_v25 = vadd.f32 %v1399_v24, %v2592_v50 }
 0x415   : > { %1488 = vst [vmem:[%s2598_s18 + $0x70] sm:$0xff] %v2056_v53 }
 0x416   : > { %2057 = vtanh.f32 %v1400_v25 }
 0x41b   : > { %v1402_v2 = vpop.f32.mrf.mxu1 }
 0x41c   : > { %v2058_v26 = vpop.eup %2057  ;;  %v1403_v27 = vadd.f32 %v1402_v2, %v2592_v50 }
 0x41d   : > { %1489 = vst [vmem:[%s2598_s18 + $0x78] sm:$0xff] %v2058_v26 }
 0x41e   : > { %2059 = vtanh.f32 %v1403_v27 }
 0x423   : > { %v1404_v28 = vpop.f32.mrf.mxu1 }
 0x424   : > { %v2060_v29 = vpop.eup %2059  ;;  %v1405_v30 = vadd.f32 %v1404_v28, %v2592_v50 }
 0x425   : > { %1490 = vst [vmem:[%s2598_s18 + $0x80] sm:$0xff] %v2060_v29 }
 0x426   : > { %2061 = vtanh.f32 %v1405_v30 }
 0x42b   : > { %v1407_v31 = vpop.f32.mrf.mxu1 }
 0x42c   : > { %v2062_v32 = vpop.eup %2061  ;;  %v1408_v33 = vadd.f32 %v1407_v31, %v2592_v50 }
 0x42d   : > { %1491 = vst [vmem:[%s2598_s18 + $0x88] sm:$0xff] %v2062_v32 }
 0x42e   : > { %2063 = vtanh.f32 %v1408_v33 }
 0x433   : > { %v1409_v35 = vpop.f32.mrf.mxu1 }
 0x434   : > { %v2064_v36 = vpop.eup %2063  ;;  %v1410_v37 = vadd.f32 %v1409_v35, %v2592_v50 }
 0x435   : > { %1492 = vst [vmem:[%s2598_s18 + $0x90] sm:$0xff] %v2064_v36 }
 0x436   : > { %2065 = vtanh.f32 %v1410_v37 }
 0x43b   : > { %v1412_v55 = vpop.f32.mrf.mxu1 }
 0x43c   : > { %v2066_v38 = vpop.eup %2065  ;;  %v1413_v39 = vadd.f32 %v1412_v55, %v2592_v50 }
 0x43d   : > { %1493 = vst [vmem:[%s2598_s18 + $0x98] sm:$0xff] %v2066_v38 }
 0x43e   : > { %2067 = vtanh.f32 %v1413_v39 }
 0x443   : > { %v1414_v40 = vpop.f32.mrf.mxu1 }
 0x444   : > { %v2068_v41 = vpop.eup %2067  ;;  %v1415_v42 = vadd.f32 %v1414_v40, %v2592_v50 }
 0x445   : > { %1494 = vst [vmem:[%s2598_s18 + $0xa0] sm:$0xff] %v2068_v41 }
 0x446   : > { %2069 = vtanh.f32 %v1415_v42 }
 0x44b   : > { %v1417_v43 = vpop.f32.mrf.mxu1 }
 0x44c   : > { %v2070_v44 = vpop.eup %2069  ;;  %v1418_v45 = vadd.f32 %v1417_v43, %v2592_v50 }
 0x44d   : > { %1495 = vst [vmem:[%s2598_s18 + $0xa8] sm:$0xff] %v2070_v44 }
 0x44e   : > { %2071 = vtanh.f32 %v1418_v45 }
 0x453   : > { %v1419_v46 = vpop.f32.mrf.mxu1 }
 0x454   : > { %v2072_v47 = vpop.eup %2071  ;;  %v1420_v48 = vadd.f32 %v1419_v46, %v2592_v50 }
 0x455   : > { %1496 = vst [vmem:[%s2598_s18 + $0xb0] sm:$0xff] %v2072_v47 }
 0x456   : > { %2073 = vtanh.f32 %v1420_v48 }
 0x45b   : > { %v1422_v11 = vpop.f32.mrf.mxu1 }
 0x45c   : > { %v2074_v49 = vpop.eup %2073  ;;  %v1423_v13 = vadd.f32 %v1422_v11, %v2592_v50 }
 0x45d   : > { %1497 = vst [vmem:[%s2598_s18 + $0xb8] sm:$0xff] %v2074_v49 }
 0x45e   : > { %2075 = vtanh.f32 %v1423_v13 }
 0x463   : > { %v1424_v51 = vpop.f32.mrf.mxu1 }
 0x464   : > { %v2076_v52 = vpop.eup %2075  ;;  %v1425_v54 = vadd.f32 %v1424_v51, %v2592_v50 }
 0x465   : > { %1498 = vst [vmem:[%s2598_s18 + $0xc0] sm:$0xff] %v2076_v52 }
 0x466   : > { %2077 = vtanh.f32 %v1425_v54 }
 0x46b   : > { %v1427_v34 = vpop.f32.mrf.mxu1 }
 0x46c   : > { %v2078_v56 = vpop.eup %2077  ;;  %v1428_v57 = vadd.f32 %v1427_v34, %v2592_v50 }
 0x46d   : > { %1499 = vst [vmem:[%s2598_s18 + $0xc8] sm:$0xff] %v2078_v56 }
 0x46e   : > { %2079 = vtanh.f32 %v1428_v57 }
 0x473   : > { %v1429_v58 = vpop.f32.mrf.mxu1 }
 0x474   : > { %v2080_v59 = vpop.eup %2079  ;;  %v1430_v1 = vadd.f32 %v1429_v58, %v2592_v50 }
 0x475   : > { %1500 = vst [vmem:[%s2598_s18 + $0xd0] sm:$0xff] %v2080_v59 }
 0x476   : > { %2081 = vtanh.f32 %v1430_v1 }
 0x47b   : > { %v1432_v60 = vpop.f32.mrf.mxu1 }
 0x47c   : > { %v2082_v61 = vpop.eup %2081  ;;  %v1433_v62 = vadd.f32 %v1432_v60, %v2592_v50 }
 0x47d   : > { %1501 = vst [vmem:[%s2598_s18 + $0xd8] sm:$0xff] %v2082_v61 }
 0x47e   : > { %2083 = vtanh.f32 %v1433_v62 }
 0x483   : > { %v1434_v63 = vpop.f32.mrf.mxu1 }
 0x484   : > { %v2084_v0 = vpop.eup %2083  ;;  %v1435_v3 = vadd.f32 %v1434_v63, %v2592_v50 }
 0x485   : > { %1502 = vst [vmem:[%s2598_s18 + $0xe0] sm:$0xff] %v2084_v0 }
 0x486   : > { %2085 = vtanh.f32 %v1435_v3 }
 0x48b   : > { %v1437_v4 = vpop.f32.mrf.mxu1 }
 0x48c   : > { %v2086_v5 = vpop.eup %2085  ;;  %v1438_v6 = vadd.f32 %v1437_v4, %v2592_v50 }
 0x48d   : > { %1503 = vst [vmem:[%s2598_s18 + $0xe8] sm:$0xff] %v2086_v5 }
 0x48e   : > { %2087 = vtanh.f32 %v1438_v6 }
 0x493   : > { %v1439_v7 = vpop.f32.mrf.mxu1 }
 0x494   : > { %v2088_v8 = vpop.eup %2087  ;;  %v1440_v9 = vadd.f32 %v1439_v7, %v2592_v50 }
 0x495   : > { %1504 = vst [vmem:[%s2598_s18 + $0xf0] sm:$0xff] %v2088_v8 }
 0x496   : > { %2089 = vtanh.f32 %v1440_v9 }
 0x49c   : > { %v2090_v10 = vpop.eup %2089 }
 0x49d   : > { %1505 = vst [vmem:[%s2598_s18 + $0xf8] sm:$0xff] %v2090_v10 }
 0x49e   : > { %2209 = shalt.err (!%p2206_p10)
}
 0x49f   : > { %s2260_s22 = smov 128   ;;  %s2261_s24 = smov 8  }
 0x4a0   : > { %1900 = dma.vmem_to_hbm [thread:$0]  (%p2348_p3), %s1520_s29, 4096, %s1522_s4, %s1507_s5, %s2260_s22, %s2260_s22, %s2261_s24  }
 0x4a1 PF: > { %s1536_s25 = sand.u32 1, %s2240_s12   ;;  %p2719_p12 = scmp.ge.s32.totalorder %s2252_s15, 2 }
 0x4a2   : > { %s1537_s30 = scalar_lea.sflag [#allocation4], %s1536_s25 }
 0x4a3   : > { %p1914_p13 = pnand %p2719_p12, %p2317_p6 }
 0x4a5   : > { %p1915_p0 = pneg %p1914_p13 }
 0x4a7   : > { %2235 = dma.done.wait (%p1915_p0), %s1537_s30, 4096  }
 0x4a8   : > { %2237 = vsyncadd (%p1915_p0), %s1537_s30, 4294963200  ;;  %p17_p5 = scmp.ge.s32.totalorder %s2338_s6, 4   ;;  %s2720_s12 = smov %s2244_s13 }
 0x4a9   : > { %s2721_s13 = smov %s2248_s14  ;;  %s2722_s14 = smov %s2354_s10 }
 0x4aa   : > { %s2723_s15 = smov %s2338_s6  ;;  %19 = sbr.rel (!%p17_p5) target bundleno = 6 (0x6), region = 90 }
 0x4af   :  { %1543 = vsyncpa [#allocation3], 1 }
 0x4b0   :  { %1545 = vsyncpa [#allocation3 + $0x1], 1 }
 0x4b1   :  { %1546 = vsyncpa [#allocation6], 1 }
 0x4b2   :  { %1547 = vsyncpa [#allocation4], 1 }
 0x4b3   :  { %1549 = vsyncpa [#allocation4 + $0x1], 1 }

</bundles_post_ra>
